<compile_context>
chip_gen: v6e
topology: v6e:2x2x1
jax: 0.10.0
libtpu: 0.0.40
codegen_flags: <defaults>
</compile_context>

<pallas_src>
import functools

import jax
import jax.numpy as jnp
import numpy as np
from jax.experimental import pallas as pl
from jax.experimental.pallas import tpu as pltpu

HW = 9 * 9           # spatial size fixed by fc = Linear(2*9*9, 82)
N_OUT = 82
PAD_OUT = 128        # lane-dense padded output width
BN_EPS = 1e-5
LEAKY_SLOPE = 0.01   # torch.nn.LeakyReLU default
MAX_TILE_N = 256     # batch-tile rows (multiple of 8); VMEM-safe on v5e/v6e/v7x
VMEM_LIMIT = 32 * 1024 * 1024


def _round_up(x, m):
    return (x + m - 1) // m * m


# --------------------------------------------------------------------------
# Kernel 1: 1x1 conv (as one bf16 MXU matmul) + BN sum / sum-sq accumulation.
# --------------------------------------------------------------------------
def conv_stats_kernel(x_ref, wexp_ref, a_ref, stats_ref):
    """
    x_ref:     (TILE_N, C*81) bf16  batch tile, per-sample channel-major
    wexp_ref:  (C*81, 162)    bf16  block-diag expanded conv weight (resident)
    a_ref:     (TILE_N, 162)  f32   conv output, already in the FC layout
    stats_ref: (2, 162)       f32   rows = [column sums ; column sum-sq],
                                    accumulated across batch tiles
    """
    a = jnp.dot(x_ref[...], wexp_ref[...], preferred_element_type=jnp.float32)
    a_ref[...] = a

    col_s = jnp.sum(a, axis=0, keepdims=True)          # (1, 162)
    col_q = jnp.sum(a * a, axis=0, keepdims=True)      # (1, 162)

    @pl.when(pl.program_id(0) == 0)
    def _():
        stats_ref[...] = jnp.zeros_like(stats_ref)

    stats_ref[0:1, :] = stats_ref[0:1, :] + col_s
    stats_ref[1:2, :] = stats_ref[1:2, :] + col_q


# --------------------------------------------------------------------------
# Kernel 2: fold BN stats -> scale/shift, LeakyReLU, FC matmul, softmax.
# --------------------------------------------------------------------------
def apply_kernel(a_ref, stats_ref, gamma_row_ref, beta_row_ref, wf_ref, bf_ref,
                 out_ref, *, inv_count):
    """
    a_ref:         (TILE_N, 162) f32   conv output tile
    stats_ref:     (2, 162)      f32   full-batch column sums / sum-sq
    gamma_row_ref: (1, 162)      f32   BN gamma broadcast per lane
    beta_row_ref:  (1, 162)      f32   BN beta broadcast per lane
    wf_ref:        (162, 128)    bf16  fc weight (transposed, zero-padded)
    bf_ref:        (1, 128)      f32   fc bias, padded cols = -1e30
    out_ref:       (TILE_N, 128) f32   softmax probabilities (cols 82.. are 0)
    """
    lane = jax.lax.broadcasted_iota(jnp.int32, (1, 2 * HW), 1)
    is_c0 = lane < HW                                   # lanes [0,81) = chan 0

    col_s = stats_ref[0:1, :]
    col_q = stats_ref[1:2, :]
    zero = jnp.zeros_like(col_s)
    s0 = jnp.sum(jnp.where(is_c0, col_s, zero), axis=1, keepdims=True)  # (1,1)
    q0 = jnp.sum(jnp.where(is_c0, col_q, zero), axis=1, keepdims=True)
    s_all = jnp.sum(col_s, axis=1, keepdims=True)
    q_all = jnp.sum(col_q, axis=1, keepdims=True)
    s1 = s_all - s0
    q1 = q_all - q0

    mean0 = s0 * inv_count
    mean1 = s1 * inv_count
    var0 = q0 * inv_count - mean0 * mean0
    var1 = q1 * inv_count - mean1 * mean1

    mean_row = jnp.where(is_c0, mean0, mean1)           # (1, 162)
    var_row = jnp.where(is_c0, var0, var1)
    scale_row = gamma_row_ref[...] * jax.lax.rsqrt(var_row + BN_EPS)
    shift_row = beta_row_ref[...] - mean_row * scale_row

    h = a_ref[...] * scale_row + shift_row              # BN (conv bias cancels)
    h = jnp.maximum(h, LEAKY_SLOPE * h)                 # LeakyReLU

    logits = jnp.dot(h.astype(jnp.bfloat16), wf_ref[...],
                     preferred_element_type=jnp.float32) + bf_ref[...]
    m = jnp.max(logits, axis=-1, keepdims=True)
    e = jnp.exp(logits - m)                             # padded cols -> 0
    denom = jnp.sum(e, axis=-1, keepdims=True)
    r = pl.reciprocal(denom, approx=True)
    r = r * (2.0 - denom * r)                           # one Newton step
    out_ref[...] = e * r


# --------------------------------------------------------------------------
# Wrapper
# --------------------------------------------------------------------------
def prepare_params(params):
    """One-time (parameter-load-time) packing of weights into kernel layouts."""
    wc = params["conv_w"].astype(jnp.float32)           # (2, C); conv bias
    c = wc.shape[1]                                     # cancels under BN
    eye = jnp.eye(HW, dtype=jnp.float32)
    # w_exp[c*81+p, o*81+q] = conv_w[o, c] * (p == q)
    w_exp = jnp.einsum("oc,pq->cpoq", wc, eye).reshape(c * HW, 2 * HW)

    wf_pad = jnp.zeros((2 * HW, PAD_OUT), jnp.float32).at[:, :N_OUT].set(
        params["fc_w"].T)
    bf_pad = jnp.full((1, PAD_OUT), -1e30, jnp.float32).at[0, :N_OUT].set(
        params["fc_b"])

    gamma_row = jnp.repeat(params["bn_gamma"].astype(jnp.float32), HW)[None, :]
    beta_row = jnp.repeat(params["bn_beta"].astype(jnp.float32), HW)[None, :]

    return {
        "w_exp": w_exp.astype(jnp.bfloat16),    # bf16 halves the weight DMA
        "wf_pad": wf_pad.astype(jnp.bfloat16),
        "bf_pad": bf_pad,                       # f32 keeps -1e30 exact thru exp
        "gamma_row": gamma_row,
        "beta_row": beta_row,
    }


@jax.jit
def policy_head_forward(x, prep):
    """x: (N, C, 9, 9) float NCHW.  prep: prepare_params output.
    Returns (N, 82) softmax probabilities (f32)."""
    n, c, h, w = x.shape
    assert h == 9 and w == 9, "PolicyHead fc assumes 9x9 boards"

    tile = min(MAX_TILE_N, _round_up(n, 8))
    n_pad = _round_up(n, tile)
    num_tiles = n_pad // tile
    ck = c * HW

    # Free reshape of contiguous NCHW; bf16 halves the x DMA (in a full net
    # the trunk would already emit bf16 activations).
    xf = x.reshape(n, ck).astype(jnp.bfloat16)
    if n_pad != n:
        # Zero rows are exact no-ops for the BN statistics.
        xf = jnp.pad(xf, ((0, n_pad - n), (0, 0)))

    cost1 = pl.CostEstimate(
        flops=2 * n_pad * ck * (2 * HW),
        transcendentals=0,
        bytes_accessed=(n_pad * ck * 2 + ck * (2 * HW) * 2
                        + n_pad * (2 * HW) * 4 + 2 * (2 * HW) * 4))

    a_out, stats = pl.pallas_call(
        conv_stats_kernel,
        out_shape=(jax.ShapeDtypeStruct((n_pad, 2 * HW), jnp.float32),
                   jax.ShapeDtypeStruct((2, 2 * HW), jnp.float32)),
        grid=(num_tiles,),
        in_specs=[pl.BlockSpec((tile, ck), lambda i: (i, 0)),
                  pl.BlockSpec((ck, 2 * HW), lambda i: (0, 0))],
        out_specs=(pl.BlockSpec((tile, 2 * HW), lambda i: (i, 0)),
                   pl.BlockSpec((2, 2 * HW), lambda i: (0, 0))),
        compiler_params=pltpu.CompilerParams(
            dimension_semantics=("arbitrary",),
            vmem_limit_bytes=VMEM_LIMIT),
        cost_estimate=cost1,
    )(xf, prep["w_exp"])

    cost2 = pl.CostEstimate(
        flops=2 * n_pad * (2 * HW) * PAD_OUT + 8 * n_pad * (2 * HW),
        transcendentals=n_pad * PAD_OUT,
        bytes_accessed=(n_pad * (2 * HW) * 4 + (2 * HW) * PAD_OUT * 2
                        + n_pad * PAD_OUT * 4 + 6 * (2 * HW) * 4 + PAD_OUT * 4))

    out = pl.pallas_call(
        functools.partial(apply_kernel, inv_count=1.0 / (n * HW)),
        out_shape=jax.ShapeDtypeStruct((n_pad, PAD_OUT), jnp.float32),
        grid=(num_tiles,),
        in_specs=[pl.BlockSpec((tile, 2 * HW), lambda i: (i, 0)),
                  pl.BlockSpec((2, 2 * HW), lambda i: (0, 0)),
                  pl.BlockSpec((1, 2 * HW), lambda i: (0, 0)),
                  pl.BlockSpec((1, 2 * HW), lambda i: (0, 0)),
                  pl.BlockSpec((2 * HW, PAD_OUT), lambda i: (0, 0)),
                  pl.BlockSpec((1, PAD_OUT), lambda i: (0, 0))],
        out_specs=pl.BlockSpec((tile, PAD_OUT), lambda i: (i, 0)),
        compiler_params=pltpu.CompilerParams(
            dimension_semantics=("parallel",),       # v7x megacore shards tiles
            vmem_limit_bytes=VMEM_LIMIT),
        cost_estimate=cost2,
    )(a_out, stats, prep["gamma_row"], prep["beta_row"],
      prep["wf_pad"], prep["bf_pad"])

    return out[:n, :N_OUT]


# --------------------------------------------------------------------------
# Pure-JAX reference + demo
# --------------------------------------------------------------------------
def policy_head_reference(x, params):
    """Pure-JAX f32 reference matching the PyTorch forward (training-mode BN)."""
    n = x.shape[0]
    wc, bc = params["conv_w"], params["conv_b"]
    a = jnp.einsum("oc,nchw->nohw", wc, x) + bc.reshape(1, 2, 1, 1)
    mean = jnp.mean(a, axis=(0, 2, 3), keepdims=True)
    var = jnp.mean((a - mean) ** 2, axis=(0, 2, 3), keepdims=True)
    hbn = (a - mean) * jax.lax.rsqrt(var + BN_EPS)
    hbn = (hbn * params["bn_gamma"].reshape(1, 2, 1, 1)
           + params["bn_beta"].reshape(1, 2, 1, 1))
    hbn = jnp.where(hbn >= 0, hbn, LEAKY_SLOPE * hbn)
    f = hbn.reshape(n, 2 * HW)
    logits = f @ params["fc_w"].T + params["fc_b"]
    return jax.nn.softmax(logits, axis=1)


def make_params(key, num_channels):
    ks = jax.random.split(key, 6)
    return {
        "conv_w": 0.1 * jax.random.normal(ks[0], (2, num_channels), jnp.float32),
        "conv_b": 0.1 * jax.random.normal(ks[1], (2,), jnp.float32),
        "bn_gamma": 1.0 + 0.1 * jax.random.normal(ks[2], (2,), jnp.float32),
        "bn_beta": 0.1 * jax.random.normal(ks[3], (2,), jnp.float32),
        "fc_w": 0.1 * jax.random.normal(ks[4], (N_OUT, 2 * HW), jnp.float32),
        "fc_b": 0.1 * jax.random.normal(ks[5], (N_OUT,), jnp.float32),
    }


if __name__ == "__main__":
    # hparams implied by the module: num_channels (kernal_size unused by this head)
    num_channels = 32
    batch = 2

    key = jax.random.PRNGKey(0)
    kx, kp = jax.random.split(key)
    x = jax.random.normal(kx, (batch, num_channels, 9, 9), jnp.float32)
    params = make_params(kp, num_channels)

    prep = prepare_params(params)          # one-time, parameter-load-time packing
    out = jax.block_until_ready(policy_head_forward(x, prep))
    ref = jax.block_until_ready(policy_head_reference(x, params))

    # Tolerances cover bf16 MXU operands + one-pass variance; semantics match.
    np.testing.assert_allclose(np.asarray(out), np.asarray(ref),
                               rtol=2e-2, atol=2e-4)
    assert out.shape == (batch, N_OUT)
    np.testing.assert_allclose(np.asarray(out).sum(axis=1), np.ones(batch),
                               rtol=1e-3)

    print("KERNEL_OK")
</pallas_src>

<mosaic_0001>
module attributes {stable_mosaic.version = 11 : i64} {
  func.func @conv_stats_kernel(%arg0: i32, %arg1: memref<8x2592xbf16, #tpu.memory_space<vmem>>, %arg2: memref<2592x162xbf16, #tpu.memory_space<vmem>>, %arg3: memref<8x162xf32, #tpu.memory_space<vmem>>, %arg4: memref<2x162xf32, #tpu.memory_space<vmem>>) attributes {dimension_semantics = [#tpu.dimension_semantics<arbitrary>], iteration_bounds = array<i64: 1>, scalar_prefetch = 0 : i64, scratch_operands = 0 : i64, tpu.core_type = #tpu.core_type<tc>, window_params = [{transform_indices = @transform_0, window_bounds = array<i64: 8, 2592>}, {pipeline_mode = #tpu.pipeline_mode<synchronous>, transform_indices = @transform_1, window_bounds = array<i64: 2592, 162>}, {transform_indices = @transform_2, window_bounds = array<i64: 8, 162>}, {pipeline_mode = #tpu.pipeline_mode<synchronous>, transform_indices = @transform_3, window_bounds = array<i64: 2, 162>}]} {
    %c0 = arith.constant 0 : index
    %c0_0 = arith.constant 0 : index
    %0 = vector.load %arg1[%c0, %c0_0] : memref<8x2592xbf16, #tpu.memory_space<vmem>>, vector<8x2592xbf16>
    %c0_1 = arith.constant 0 : index
    %c0_2 = arith.constant 0 : index
    %1 = vector.load %arg2[%c0_1, %c0_2] : memref<2592x162xbf16, #tpu.memory_space<vmem>>, vector<2592x162xbf16>
    %cst = arith.constant dense<0.000000e+00> : vector<8x162xf32>
    %2 = tpu.matmul %0, %1, %cst {dimension_numbers = #tpu.dot_dimension_numbers<[1], [0], [0], [1], [0, 0, 1, 1], [], []>} : vector<8x2592xbf16>, vector<2592x162xbf16>, vector<8x162xf32> -> vector<8x162xf32>
    %c0_3 = arith.constant 0 : index
    %c0_4 = arith.constant 0 : index
    %3 = vector.load %arg3[%c0_3, %c0_4] : memref<8x162xf32, #tpu.memory_space<vmem>>, vector<8x162xf32>
    tpu.vector_store %arg3[%c0_3, %c0_4], %2 {strides = array<i32>} : memref<8x162xf32, #tpu.memory_space<vmem>>, vector<8x162xf32>,
    %cst_5 = arith.constant dense<0.000000e+00> : vector<162xf32>
    %4 = vector.multi_reduction <add>, %2, %cst_5 [0] : vector<8x162xf32> to vector<162xf32>
    %5 = vector.shape_cast %4 : vector<162xf32> to vector<1x162xf32>
    %6 = arith.mulf %2, %2 : vector<8x162xf32>
    %cst_6 = arith.constant dense<0.000000e+00> : vector<162xf32>
    %7 = vector.multi_reduction <add>, %6, %cst_6 [0] : vector<8x162xf32> to vector<162xf32>
    %8 = vector.shape_cast %7 : vector<162xf32> to vector<1x162xf32>
    %c0_i32 = arith.constant 0 : i32
    %9 = arith.cmpi eq, %arg0, %c0_i32 : i32
    %10 = arith.extui %9 : i1 to i32
    %c0_i32_7 = arith.constant 0 : i32
    %11 = arith.cmpi ne, %10, %c0_i32_7 : i32
    scf.if %11 {
      %cst_15 = arith.constant 0.000000e+00 : f32
      %18 = vector.broadcast %cst_15 : f32 to vector<2x162xf32>
      %c0_16 = arith.constant 0 : index
      %c0_17 = arith.constant 0 : index
      %19 = vector.load %arg4[%c0_16, %c0_17] : memref<2x162xf32, #tpu.memory_space<vmem>>, vector<2x162xf32>
      tpu.vector_store %arg4[%c0_16, %c0_17], %18 {strides = array<i32>} : memref<2x162xf32, #tpu.memory_space<vmem>>, vector<2x162xf32>,
    } else {
    }
    %c0_8 = arith.constant 0 : index
    %c0_9 = arith.constant 0 : index
    %12 = vector.load %arg4[%c0_8, %c0_9] : memref<2x162xf32, #tpu.memory_space<vmem>>, vector<1x162xf32>
    %13 = arith.addf %12, %5 : vector<1x162xf32>
    %c0_10 = arith.constant 0 : index
    %c0_11 = arith.constant 0 : index
    %14 = vector.load %arg4[%c0_10, %c0_11] : memref<2x162xf32, #tpu.memory_space<vmem>>, vector<1x162xf32>
    tpu.vector_store %arg4[%c0_10, %c0_11], %13 {strides = array<i32>} : memref<2x162xf32, #tpu.memory_space<vmem>>, vector<1x162xf32>,
    %c1 = arith.constant 1 : index
    %c0_12 = arith.constant 0 : index
    %15 = vector.load %arg4[%c1, %c0_12] : memref<2x162xf32, #tpu.memory_space<vmem>>, vector<1x162xf32>
    %16 = arith.addf %15, %8 : vector<1x162xf32>
    %c1_13 = arith.constant 1 : index
    %c0_14 = arith.constant 0 : index
    %17 = vector.load %arg4[%c1_13, %c0_14] : memref<2x162xf32, #tpu.memory_space<vmem>>, vector<1x162xf32>
    tpu.vector_store %arg4[%c1_13, %c0_14], %16 {strides = array<i32>} : memref<2x162xf32, #tpu.memory_space<vmem>>, vector<1x162xf32>,
    return
  }
  func.func @transform_0(%arg0: i32) -> (i32, i32) {
    %c0_i32 = arith.constant 0 : i32
    %c0_i32_0 = arith.constant 0 : i32
    return %arg0, %c0_i32 : i32, i32
  }
  func.func @transform_1(%arg0: i32) -> (i32, i32) {
    %c0_i32 = arith.constant 0 : i32
    %c0_i32_0 = arith.constant 0 : i32
    %c0_i32_1 = arith.constant 0 : i32
    return %c0_i32, %c0_i32_0 : i32, i32
  }
  func.func @transform_2(%arg0: i32) -> (i32, i32) {
    %c0_i32 = arith.constant 0 : i32
    %c0_i32_0 = arith.constant 0 : i32
    return %arg0, %c0_i32 : i32, i32
  }
  func.func @transform_3(%arg0: i32) -> (i32, i32) {
    %c0_i32 = arith.constant 0 : i32
    %c0_i32_0 = arith.constant 0 : i32
    %c0_i32_1 = arith.constant 0 : i32
    return %c0_i32, %c0_i32_0 : i32, i32
  }
}

module attributes {stable_mosaic.version = 11 : i64} {
  func.func @apply_kernel(%arg0: i32, %arg1: memref<8x162xf32, #tpu.memory_space<vmem>>, %arg2: memref<2x162xf32, #tpu.memory_space<vmem>>, %arg3: memref<1x162xf32, #tpu.memory_space<vmem>>, %arg4: memref<1x162xf32, #tpu.memory_space<vmem>>, %arg5: memref<162x128xbf16, #tpu.memory_space<vmem>>, %arg6: memref<1x128xf32, #tpu.memory_space<vmem>>, %arg7: memref<8x128xf32, #tpu.memory_space<vmem>>) attributes {dimension_semantics = [#tpu.dimension_semantics<parallel>], iteration_bounds = array<i64: 1>, scalar_prefetch = 0 : i64, scratch_operands = 0 : i64, tpu.core_type = #tpu.core_type<tc>, window_params = [{transform_indices = @transform_0, window_bounds = array<i64: 8, 162>}, {pipeline_mode = #tpu.pipeline_mode<synchronous>, transform_indices = @transform_1, window_bounds = array<i64: 2, 162>}, {pipeline_mode = #tpu.pipeline_mode<synchronous>, transform_indices = @transform_2, window_bounds = array<i64: 1, 162>}, {pipeline_mode = #tpu.pipeline_mode<synchronous>, transform_indices = @transform_3, window_bounds = array<i64: 1, 162>}, {pipeline_mode = #tpu.pipeline_mode<synchronous>, transform_indices = @transform_4, window_bounds = array<i64: 162, 128>}, {pipeline_mode = #tpu.pipeline_mode<synchronous>, transform_indices = @transform_5, window_bounds = array<i64: 1, 128>}, {transform_indices = @transform_6, window_bounds = array<i64: 8, 128>}]} {
    %0 = tpu.iota {dimensions = array<i32: 1>} : vector<1x162xi32>
    %c81_i32 = arith.constant 81 : i32
    %1 = vector.broadcast %c81_i32 : i32 to vector<1x162xi32>
    %2 = arith.cmpi slt, %0, %1 : vector<1x162xi32>
    %c0 = arith.constant 0 : index
    %c0_0 = arith.constant 0 : index
    %3 = vector.load %arg2[%c0, %c0_0] : memref<2x162xf32, #tpu.memory_space<vmem>>, vector<1x162xf32>
    %c1 = arith.constant 1 : index
    %c0_1 = arith.constant 0 : index
    %4 = vector.load %arg2[%c1, %c0_1] : memref<2x162xf32, #tpu.memory_space<vmem>>, vector<1x162xf32>
    %cst = arith.constant 0.000000e+00 : f32
    %5 = vector.broadcast %cst : f32 to vector<1x162xf32>
    %6 = arith.select %2, %3, %5 : vector<1x162xi1>, vector<1x162xf32>
    %cst_2 = arith.constant dense<0.000000e+00> : vector<1xf32>
    %7 = vector.multi_reduction <add>, %6, %cst_2 [1] : vector<1x162xf32> to vector<1xf32>
    %8 = vector.shape_cast %7 : vector<1xf32> to vector<1x1xf32>
    %9 = arith.select %2, %4, %5 : vector<1x162xi1>, vector<1x162xf32>
    %cst_3 = arith.constant dense<0.000000e+00> : vector<1xf32>
    %10 = vector.multi_reduction <add>, %9, %cst_3 [1] : vector<1x162xf32> to vector<1xf32>
    %11 = vector.shape_cast %10 : vector<1xf32> to vector<1x1xf32>
    %cst_4 = arith.constant dense<0.000000e+00> : vector<1xf32>
    %12 = vector.multi_reduction <add>, %3, %cst_4 [1] : vector<1x162xf32> to vector<1xf32>
    %13 = vector.shape_cast %12 : vector<1xf32> to vector<1x1xf32>
    %cst_5 = arith.constant dense<0.000000e+00> : vector<1xf32>
    %14 = vector.multi_reduction <add>, %4, %cst_5 [1] : vector<1x162xf32> to vector<1xf32>
    %15 = vector.shape_cast %14 : vector<1xf32> to vector<1x1xf32>
    %16 = arith.subf %13, %8 : vector<1x1xf32>
    %17 = arith.subf %15, %11 : vector<1x1xf32>
    %cst_6 = arith.constant 0.00617283955 : f32
    %18 = vector.broadcast %cst_6 : f32 to vector<1x1xf32>
    %19 = arith.mulf %8, %18 : vector<1x1xf32>
    %cst_7 = arith.constant 0.00617283955 : f32
    %20 = vector.broadcast %cst_7 : f32 to vector<1x1xf32>
    %21 = arith.mulf %16, %20 : vector<1x1xf32>
    %cst_8 = arith.constant 0.00617283955 : f32
    %22 = vector.broadcast %cst_8 : f32 to vector<1x1xf32>
    %23 = arith.mulf %11, %22 : vector<1x1xf32>
    %24 = arith.mulf %19, %19 : vector<1x1xf32>
    %25 = arith.subf %23, %24 : vector<1x1xf32>
    %cst_9 = arith.constant 0.00617283955 : f32
    %26 = vector.broadcast %cst_9 : f32 to vector<1x1xf32>
    %27 = arith.mulf %17, %26 : vector<1x1xf32>
    %28 = arith.mulf %21, %21 : vector<1x1xf32>
    %29 = arith.subf %27, %28 : vector<1x1xf32>
    %30 = vector.shape_cast %19 : vector<1x1xf32> to vector<1x1xf32>
    %31 = vector.broadcast %30 : vector<1x1xf32> to vector<1x162xf32>
    %32 = vector.shape_cast %21 : vector<1x1xf32> to vector<1x1xf32>
    %33 = vector.broadcast %32 : vector<1x1xf32> to vector<1x162xf32>
    %34 = arith.select %2, %31, %33 : vector<1x162xi1>, vector<1x162xf32>
    %35 = vector.shape_cast %25 : vector<1x1xf32> to vector<1x1xf32>
    %36 = vector.broadcast %35 : vector<1x1xf32> to vector<1x162xf32>
    %37 = vector.shape_cast %29 : vector<1x1xf32> to vector<1x1xf32>
    %38 = vector.broadcast %37 : vector<1x1xf32> to vector<1x162xf32>
    %39 = arith.select %2, %36, %38 : vector<1x162xi1>, vector<1x162xf32>
    %c0_10 = arith.constant 0 : index
    %c0_11 = arith.constant 0 : index
    %40 = vector.load %arg3[%c0_10, %c0_11] : memref<1x162xf32, #tpu.memory_space<vmem>>, vector<1x162xf32>
    %cst_12 = arith.constant 9.99999974E-6 : f32
    %41 = vector.broadcast %cst_12 : f32 to vector<1x162xf32>
    %42 = arith.addf %39, %41 : vector<1x162xf32>
    %43 = math.rsqrt %42 : vector<1x162xf32>
    %44 = arith.mulf %40, %43 : vector<1x162xf32>
    %c0_13 = arith.constant 0 : index
    %c0_14 = arith.constant 0 : index
    %45 = vector.load %arg4[%c0_13, %c0_14] : memref<1x162xf32, #tpu.memory_space<vmem>>, vector<1x162xf32>
    %46 = arith.mulf %34, %44 : vector<1x162xf32>
    %47 = arith.subf %45, %46 : vector<1x162xf32>
    %c0_15 = arith.constant 0 : index
    %c0_16 = arith.constant 0 : index
    %48 = vector.load %arg1[%c0_15, %c0_16] : memref<8x162xf32, #tpu.memory_space<vmem>>, vector<8x162xf32>
    %49 = vector.broadcast %44 : vector<1x162xf32> to vector<8x162xf32>
    %50 = arith.mulf %48, %49 : vector<8x162xf32>
    %51 = vector.broadcast %47 : vector<1x162xf32> to vector<8x162xf32>
    %52 = arith.addf %50, %51 : vector<8x162xf32>
    %cst_17 = arith.constant 0.00999999977 : f32
    %53 = vector.broadcast %cst_17 : f32 to vector<8x162xf32>
    %54 = arith.mulf %53, %52 : vector<8x162xf32>
    %55 = arith.maximumf %52, %54 : vector<8x162xf32>
    %56 = arith.truncf %55 : vector<8x162xf32> to vector<8x162xbf16>
    %c0_18 = arith.constant 0 : index
    %c0_19 = arith.constant 0 : index
    %57 = vector.load %arg5[%c0_18, %c0_19] : memref<162x128xbf16, #tpu.memory_space<vmem>>, vector<162x128xbf16>
    %cst_20 = arith.constant dense<0.000000e+00> : vector<8x128xf32>
    %58 = tpu.matmul %56, %57, %cst_20 {dimension_numbers = #tpu.dot_dimension_numbers<[1], [0], [0], [1], [0, 0, 1, 1], [], []>} : vector<8x162xbf16>, vector<162x128xbf16>, vector<8x128xf32> -> vector<8x128xf32>
    %c0_21 = arith.constant 0 : index
    %c0_22 = arith.constant 0 : index
    %59 = vector.load %arg6[%c0_21, %c0_22] : memref<1x128xf32, #tpu.memory_space<vmem>>, vector<1x128xf32>
    %60 = vector.broadcast %59 : vector<1x128xf32> to vector<8x128xf32>
    %61 = arith.addf %58, %60 : vector<8x128xf32>
    %cst_23 = arith.constant dense<0xFF800000> : vector<8xf32>
    %62 = vector.multi_reduction <maximumf>, %61, %cst_23 [1] : vector<8x128xf32> to vector<8xf32>
    %63 = vector.shape_cast %62 : vector<8xf32> to vector<8x1xf32>
    %64 = vector.broadcast %63 : vector<8x1xf32> to vector<8x128xf32>
    %65 = arith.subf %61, %64 : vector<8x128xf32>
    %66 = math.exp %65 : vector<8x128xf32>
    %cst_24 = arith.constant dense<0.000000e+00> : vector<8xf32>
    %67 = vector.multi_reduction <add>, %66, %cst_24 [1] : vector<8x128xf32> to vector<8xf32>
    %68 = vector.shape_cast %67 : vector<8xf32> to vector<8x1xf32>
    %69 = tpu.reciprocal %68 {approx = true} : vector<8x1xf32> -> vector<8x1xf32>
    %70 = arith.mulf %68, %69 : vector<8x1xf32>
    %cst_25 = arith.constant 2.000000e+00 : f32
    %71 = vector.broadcast %cst_25 : f32 to vector<8x1xf32>
    %72 = arith.subf %71, %70 : vector<8x1xf32>
    %73 = arith.mulf %69, %72 : vector<8x1xf32>
    %74 = vector.broadcast %73 : vector<8x1xf32> to vector<8x128xf32>
    %75 = arith.mulf %66, %74 : vector<8x128xf32>
    %c0_26 = arith.constant 0 : index
    %c0_27 = arith.constant 0 : index
    %76 = vector.load %arg7[%c0_26, %c0_27] : memref<8x128xf32, #tpu.memory_space<vmem>>, vector<8x128xf32>
    tpu.vector_store %arg7[%c0_26, %c0_27], %75 {strides = array<i32>} : memref<8x128xf32, #tpu.memory_space<vmem>>, vector<8x128xf32>,
    return
  }
  func.func @transform_0(%arg0: i32) -> (i32, i32) {
    %c0_i32 = arith.constant 0 : i32
    %c0_i32_0 = arith.constant 0 : i32
    return %arg0, %c0_i32 : i32, i32
  }
  func.func @transform_1(%arg0: i32) -> (i32, i32) {
    %c0_i32 = arith.constant 0 : i32
    %c0_i32_0 = arith.constant 0 : i32
    %c0_i32_1 = arith.constant 0 : i32
    return %c0_i32, %c0_i32_0 : i32, i32
  }
  func.func @transform_2(%arg0: i32) -> (i32, i32) {
    %c0_i32 = arith.constant 0 : i32
    %c0_i32_0 = arith.constant 0 : i32
    %c0_i32_1 = arith.constant 0 : i32
    return %c0_i32, %c0_i32_0 : i32, i32
  }
  func.func @transform_3(%arg0: i32) -> (i32, i32) {
    %c0_i32 = arith.constant 0 : i32
    %c0_i32_0 = arith.constant 0 : i32
    %c0_i32_1 = arith.constant 0 : i32
    return %c0_i32, %c0_i32_0 : i32, i32
  }
  func.func @transform_4(%arg0: i32) -> (i32, i32) {
    %c0_i32 = arith.constant 0 : i32
    %c0_i32_0 = arith.constant 0 : i32
    %c0_i32_1 = arith.constant 0 : i32
    return %c0_i32, %c0_i32_0 : i32, i32
  }
  func.func @transform_5(%arg0: i32) -> (i32, i32) {
    %c0_i32 = arith.constant 0 : i32
    %c0_i32_0 = arith.constant 0 : i32
    %c0_i32_1 = arith.constant 0 : i32
    return %c0_i32, %c0_i32_0 : i32, i32
  }
  func.func @transform_6(%arg0: i32) -> (i32, i32) {
    %c0_i32 = arith.constant 0 : i32
    %c0_i32_0 = arith.constant 0 : i32
    return %arg0, %c0_i32 : i32, i32
  }
}

</mosaic_0001>

<bundles_post_ra>
// kernel: policy_head_forward.3
= control target key start
LH: loop header
LB: loop body
LE: loop exit
PB: predicated region body
PF: predicated region fallthrough
CT: control target
= control target key end

     0   :  { %v24_v0 = vlaneseq  ;;  %vm45_vm1 = vcmask 1040384   ;;  %vm47_vm2 = vcmask 270336   ;;  %v364_v22 = vmov 0   ;;  %s491_s1 = inlined_call_operand.vmem [shape: f32[2,162], index: 1, kind: input, shape index: {}]   ;;  %s492_s4 = inlined_call_operand.vmem [shape: bf16[162,128], index: 4, kind: input, shape index: {}]   ;;  %s493_s2 = inlined_call_operand.vmem [shape: f32[1,162], index: 2, kind: input, shape index: {}]   ;;  %s494_s3 = inlined_call_operand.vmem [shape: f32[1,162], index: 3, kind: input, shape index: {}]   ;;  %s495_s0 = inlined_call_operand.vmem [shape: f32[8,162], index: 0, kind: input, shape index: {}]   ;;  %s496_s5 = inlined_call_operand.vmem [shape: f32[1,128], index: 5, kind: input, shape index: {}]   ;;  %s497_s6 = inlined_call_operand.vmem [shape: f32[8,128], index: 6, kind: output, shape index: {}]  }
   0x1   :  { %v329_v3 = vld [vmem:[%s491_s1 + $0x1] ss:$2 sm:$0x3]  ;;  %v29_v4 = vld [vmem:[%s491_s1] ss:$2 sm:$0x3]  ;;  %272 = vmatprep.subr.bf16.mxu0 %v364_v22 }
   0x2   :  { %v401_v1 = vand.u32 127, %v24_v0  ;;  %v403_v2 = vshrl.u32 %v24_v0, 7  ;;  %v345_v21 = vld [vmem:[%s492_s4 + $0x38] sm:$0xff]   ;;  %v346_v23 = vld [vmem:[%s492_s4 + $0x30] sm:$0xff]   ;;  %v347_v24 = vld [vmem:[%s492_s4 + $0x28] sm:$0xff]   ;;  %vm265_vm3 = vcmask 277504  }
   0x3   :  { %273 = vmatpush1.bf16.msra.mxu0 %v345_v21  ;;  %v348_v25 = vld [vmem:[%s492_s4 + $0x20] sm:$0xff]   ;;  %v349_v26 = vld [vmem:[%s492_s4 + $0x18] sm:$0xff]   ;;  %v350_v27 = vld [vmem:[%s492_s4 + $0x10] sm:$0xff]   ;;  %v365_v51 = vmov 1966171168  }
   0x4   :  { %v412_v5 = vsub.s32 0, %v403_v2  ;;  %v415_v6 = vsub.s32 1, %v403_v2  ;;  %vm27_vm0 = vcmp.lt.s32.totalorder %v401_v1, 81  ;;  %274 = vmatprep.subr.bf16.mxu0 %v364_v22  ;;  %v351_v28 = vld [vmem:[%s492_s4 + $0x8] sm:$0xff]   ;;  %v352_v29 = vld [vmem:[%s492_s4] sm:$0xff]   ;;  %v103_v52 = vunpack.c.l.s4 %v365_v51 }
   0x5   :  { %v353_v30 = vld [vmem:[%s492_s4 + $0x50] ss:$0 sps:$4 sm:$0x11]   ;;  %v354_v32 = vld [vmem:[%s492_s4 + $0x48] sm:$0xff]   ;;  %v355_v33 = vld [vmem:[%s492_s4 + $0x40] sm:$0xff]  }
   0x6   :  { %v56_v7 = vrot.slane %v329_v3, %v412_v5  ;;  %v36_v8 = vrot.slane %v29_v4, %v412_v5  ;;  %v60_v9 = vrot.slane %v329_v3, %v415_v6  ;;  %v40_v10 = vrot.slane %v29_v4, %v415_v6  ;;  %v94_v59 = vld [vmem:[%s493_s2] sm:$0x3] }
   0x7   :  { %275 = vmatpush1.bf16.msra.mxu0 %v346_v23  ;;  %v270_v31 = vsel %vm45_vm1, %v353_v30, 0  ;;  %v104_v53 = vunpack.c.0.s8 %v103_v52 }
   0x8   :  { %v63_v11 = vsel %vm27_vm0, %v56_v7, 0.0  ;;  %v43_v12 = vsel %vm27_vm0, %v36_v8, 0.0  ;;  %v75_v13 = vsel %vm45_vm1, %v56_v7, 0.0  ;;  %v76_v14 = vsel %vm47_vm2, %v60_v9, 0.0  ;;  %276 = vmatprep.subr.bf16.mxu0 %v364_v22 }
   0x9   :  { %v65_v15 = vsel %vm45_vm1, %v63_v11, 0.0  ;;  %v46_v16 = vsel %vm45_vm1, %v43_v12, 0.0  ;;  %v70_v17 = vsel %vm45_vm1, %v36_v8, 0.0  ;;  %v77_v18 = vadd.f32 %v76_v14, %v75_v13  ;;  %v118_v8 = vld [vmem:[%s494_s3] sm:$0x3]  ;;  %v152_v11 = vld [vmem:[%s495_s0 + $0x8] sm:$0xff] }
   0xa   :  { %68 = vadd.xlane.f32.xlu1 %v65_v15  ;;  %50 = vadd.xlane.f32.xlu0 %v46_v16  ;;  %v71_v19 = vsel %vm47_vm2, %v40_v10, 0.0  ;;  %v107_v55 = vsub.s32 %v104_v53, %v403_v2  ;;  %v151_v10 = vld [vmem:[%s495_s0] sm:$0xff] }
   0xb   :  { %v72_v20 = vadd.f32 %v71_v19, %v70_v17  ;;  %277 = vmatpush1.bf16.msra.mxu0 %v347_v24  ;;  %v330_v24 = vld [vmem:[%s496_s5] ss:$0 sm:$0xff] }
   0xc   :  { %278 = vmatprep.subr.bf16.mxu0 %v364_v22 }
   0xe   :  { %78 = vadd.xlane.f32.xlu1 %v77_v18  ;;  %73 = vadd.xlane.f32.xlu0 %v72_v20 }
   0xf   :  { %279 = vmatpush1.bf16.msra.mxu0 %v348_v25 }
  0x10   :  { %280 = vmatprep.subr.bf16.mxu0 %v364_v22 }
  0x13   :  { %281 = vmatpush1.bf16.msra.mxu0 %v349_v26 }
  0x14   :  { %282 = vmatprep.subr.bf16.mxu0 %v364_v22 }
  0x17   :  { %283 = vmatpush1.bf16.msra.mxu0 %v350_v27 }
  0x18   :  { %284 = vmatprep.subr.bf16.mxu0 %v364_v22 }
  0x1b   :  { %285 = vmatpush1.bf16.msra.mxu0 %v351_v28 }
  0x1c   :  { %286 = vmatprep.subr.bf16.mxu0 %v364_v22 }
  0x1f   :  { %287 = vmatpush1.bf16.msra.mxu0 %v352_v29 }
  0x20   :  { %298 = vmatprep.subr.bf16.mxu0 %v364_v22 }
  0x23   :  { %299 = vmatpush2.bf16.msra.mxu0 %v270_v31 }
  0x24   :  { %300 = vmatprep.subr.bf16.mxu0 %v364_v22 }
  0x27   :  { %301 = vmatpush2.bf16.msra.mxu0 %v354_v32 }
  0x28   :  { %302 = vmatprep.subr.bf16.mxu0 %v364_v22 }
  0x2b   :  { %303 = vmatpush2.bf16.msra.mxu0 %v355_v33 }
  0x93   :  { %v69_v34 = vpop.xlane.xlu1 %68  ;;  %v51_v35 = vpop.xlane.xlu0 %50 }
  0x94   :  { %v82_v36 = vmul.f32 0.0061728396, %v51_v35  ;;  %v84_v41 = vmul.f32 0.0061728396, %v69_v34 }
  0x96   :  { %v85_v42 = vmul.f32 %v82_v36, %v82_v36 }
  0x97   :  { %v79_v37 = vpop.xlane.xlu1 %78  ;;  %v74_v38 = vpop.xlane.xlu0 %73 }
  0x98   :  { %v81_v39 = vsub.f32 %v79_v37, %v69_v34  ;;  %v80_v40 = vsub.f32 %v74_v38, %v51_v35  ;;  %v86_v46 = vsub.f32 %v84_v41, %v85_v42 }
  0x9a   :  { %v83_v43 = vmul.f32 0.0061728396, %v80_v40  ;;  %v87_v44 = vmul.f32 0.0061728396, %v81_v39 }
  0x9c   :  { %v88_v45 = vmul.f32 %v83_v43, %v83_v43  ;;  %v90_v0 = vsel %vm27_vm0, %v82_v36, %v83_v43 }
  0x9e   :  { %v89_v47 = vsub.f32 %v87_v44, %v88_v45 }
  0xa0   :  { %v92_v48 = vsel %vm27_vm0, %v86_v46, %v89_v47  ;;  %v96_v49 = vadd.f32 1e-05, %v89_v47 }
  0xa1   :  { %v95_v50 = vadd.f32 1e-05, %v92_v48 }
  0xa2   :  { %356 = vrsqrt.f32 %v96_v49 }
  0xa3   :  { %358 = vrsqrt.f32 %v95_v50 }
  0xaf   :  { %v357_v54 = vpop.eup %356 }
  0xb0   :  { %v359_v56 = vpop.eup %358 }
  0xb1   :  { %v101_v57 = vcombine.low %v359_v56, %v357_v54 }
  0xb3   :  { %v108_v58 = vrot.slane %v101_v57, %v107_v55 }
  0xb5   :  { %v115_v60 = vrot.slane %v108_v58, %v107_v55 }
  0xb7   :  { %v117_v61 = vmul.f32 %v115_v60, %v94_v59 }
  0xb9   :  { %v123_v62 = vrot.slane %v117_v61, %v412_v5  ;;  %v127_v63 = vrot.slane %v117_v61, %v415_v6 }
  0xbb   :  { %v130_v3 = vmul.f32 %v123_v62, %v90_v0  ;;  %v131_v4 = vmul.f32 %v127_v63, %v83_v43  ;;  %v154_v1 = vmul.f32 %v152_v11, %v127_v63  ;;  %v153_v14 = vmul.f32 %v151_v10, %v123_v62 }
  0xbd   :  { %v134_v7 = vcombine.low %v130_v3, %v131_v4 }
  0xbf   :  { %v141_v2 = vrot.slane %v134_v7, %v107_v55 }
  0xc1   :  { %v148_v9 = vrot.slane %v141_v2, %v107_v55 }
  0xc3   :  { %v150_v12 = vsub.f32 %v118_v8, %v148_v9 }
  0xc5   :  { %v163_v13 = vrot.slane %v150_v12, %v415_v6  ;;  %v159_v15 = vrot.slane %v150_v12, %v412_v5 }
  0xc7   :  { %v167_v16 = vadd.f32 %v163_v13, %v154_v1  ;;  %v166_v17 = vadd.f32 %v159_v15, %v153_v14 }
  0xc9   :  { %v169_v18 = vmul.f32 0.01, %v167_v16  ;;  %v168_v19 = vmul.f32 0.01, %v166_v17 }
  0xcb   :  { %v171_v20 = vmax.f32 %v167_v16, %v169_v18  ;;  %v170_v21 = vmax.f32 %v166_v17, %v168_v19 }
  0xcd   :  { %v173_v22 = vpack.c.bf16 %v171_v20, %v171_v20  ;;  %v172_v23 = vpack.c.bf16 %v170_v21, %v170_v21 }
  0xcf   :  { %342 = vmatprep.mubr.msk.bf16.mxu0 %vm265_vm3, %v173_v22 }
  0xd0   :  { %305 = vmatmul.mubr.bf16.vlgmr.msra.gmra.mxu0 %v172_v23 }
 0x190   :  { %v306_v25 = vpop.f32.mrf.mxu0 }
 0x191   :  { %v307_v6 = vadd.f32 %v330_v24, %v306_v25 }
 0x192   :  { %v308_v26 = vpop.f32.mrf.mxu0 }
 0x193   :  { %312 = vmax.xlane.f32.xlu0 %v307_v6 }
 0x194   :  { %v309_v5 = vpop.f32.mrf.mxu0 }
 0x196   :  { %v310_v27 = vpop.f32.mrf.mxu0 }
 0x21c   :  { %v313_v28 = vpop.xlane.xlu0 %312 }
 0x21d   :  { %v314_v29 = vsub.f32 %v307_v6, %v313_v28 }
 0x21f   :  { %v315_v30 = vmul.f32 1.442695, %v314_v29 }
 0x221   :  { %360 = vpow2.f32 %v315_v30 }
 0x22e   :  { %v361_v31 = vpop.eup %360 }
 0x22f   :  { %317 = vadd.xlane.f32.xlu1 %v361_v31 }
 0x2b8   :  { %v318_v32 = vpop.xlane.xlu1 %317 }
 0x2b9   :  { %362 = vrcp.f32 %v318_v32 }
 0x2c6   :  { %v363_v33 = vpop.eup %362 }
 0x2c7   :  { %v320_v34 = vmul.f32 %v363_v33, %v318_v32 }
 0x2c9   :  { %v321_v35 = vsub.f32 2.0, %v320_v34 }
 0x2cb   :  { %v322_v36 = vmul.f32 %v363_v33, %v321_v35 }
 0x2cd   :  { %v323_v37 = vmul.f32 %v361_v31, %v322_v36 }
 0x2cf   :  { %324 = vst [vmem:[%s497_s6] sm:$0xff] %v323_v37 }

// kernel: policy_head_forward.2
= control target key start
LH: loop header
LB: loop body
LE: loop exit
PB: predicated region body
PF: predicated region fallthrough
CT: control target
= control target key end

     0   :  { %vm2042_vm0 = vcmask 261120   ;;  %vm2532_vm1 = vcmask 1041408   ;;  %vm2533_vm2 = vcmask 273410   ;;  %vm2498_vm4 = vcmask 277504   ;;  %s4552_s1 = inlined_call_operand.vmem [shape: bf16[2592,162], index: 1, kind: input, shape index: {}]   ;;  %s4553_s0 = inlined_call_operand.vmem [shape: bf16[8,2592], index: 0, kind: input, shape index: {}]   ;;  %s4554_s3 = inlined_call_operand.vmem [shape: f32[2,162], index: 3, kind: output, shape index: {1}]   ;;  %s4555_s2 = inlined_call_operand.vmem [shape: f32[8,162], index: 2, kind: output, shape index: {0}]  }
   0x1   :  { %v2942_v0 = vld [vmem:[%s4552_s1 + $0x74] ss:$8 sps:$4 sm:$0xff]   ;;  %v2946_v2 = vld [vmem:[%s4552_s1 + $0x70] ss:$8 sps:$4 sm:$0xff]   ;;  %v2948_v4 = vld [vmem:[%s4552_s1 + $0x64] ss:$8 sps:$4 sm:$0xff]  }
   0x2   :  { %v2944_v1 = vld [vmem:[%s4552_s1 + $0x174] ss:$8 sps:$4 sm:$0xff]   ;;  %2046 = vmatprep.subr.bf16.mxu0 %v2942_v0  ;;  %v2947_v3 = vld [vmem:[%s4552_s1 + $0x170] ss:$8 sps:$4 sm:$0xff]   ;;  %v2950_v5 = vld [vmem:[%s4552_s1 + $0x164] ss:$8 sps:$4 sm:$0xff]  }
   0x3   :  { %2087 = vmatprep.subr.bf16.mxu1 %v2944_v1  ;;  %2047 = vmatpush1.bf16.msra.mxu0 %v2946_v2  ;;  %v2952_v6 = vld [vmem:[%s4552_s1 + $0x60] ss:$8 sps:$4 sm:$0xff]   ;;  %v2954_v8 = vld [vmem:[%s4552_s1 + $0x54] ss:$8 sps:$4 sm:$0xff]   ;;  %v2958_v10 = vld [vmem:[%s4552_s1 + $0x50] ss:$8 sps:$4 sm:$0xff]  }
   0x4   :  { %2088 = vmatpush1.bf16.msra.mxu1 %v2947_v3  ;;  %2048 = vmatprep.subr.bf16.mxu0 %v2948_v4  ;;  %v2953_v7 = vld [vmem:[%s4552_s1 + $0x160] ss:$8 sps:$4 sm:$0xff]   ;;  %v2956_v9 = vld [vmem:[%s4552_s1 + $0x154] ss:$8 sps:$4 sm:$0xff]   ;;  %v2959_v11 = vld [vmem:[%s4552_s1 + $0x150] ss:$8 sps:$4 sm:$0xff]  }
   0x5   :  { %2089 = vmatprep.subr.bf16.mxu1 %v2950_v5  ;;  %v2960_v12 = vld [vmem:[%s4552_s1 + $0x44] ss:$8 sps:$4 sm:$0xff]   ;;  %v2964_v14 = vld [vmem:[%s4552_s1 + $0x40] ss:$8 sps:$4 sm:$0xff]   ;;  %v2966_v16 = vld [vmem:[%s4552_s1 + $0x34] ss:$8 sps:$4 sm:$0xff]  }
   0x6   :  { %v2962_v13 = vld [vmem:[%s4552_s1 + $0x144] ss:$8 sps:$4 sm:$0xff]   ;;  %v2965_v15 = vld [vmem:[%s4552_s1 + $0x140] ss:$8 sps:$4 sm:$0xff]   ;;  %v2968_v17 = vld [vmem:[%s4552_s1 + $0x134] ss:$8 sps:$4 sm:$0xff]  }
   0x7   :  { %2049 = vmatpush1.bf16.msra.mxu0 %v2952_v6  ;;  %v2970_v18 = vld [vmem:[%s4552_s1 + $0x30] ss:$8 sps:$4 sm:$0xff]   ;;  %v2972_v20 = vld [vmem:[%s4552_s1 + $0x24] ss:$8 sps:$4 sm:$0xff]   ;;  %v2976_v22 = vld [vmem:[%s4552_s1 + $0x20] ss:$8 sps:$4 sm:$0xff]  }
   0x8   :  { %2090 = vmatpush1.bf16.msra.mxu1 %v2953_v7  ;;  %2050 = vmatprep.subr.bf16.mxu0 %v2954_v8  ;;  %v2971_v19 = vld [vmem:[%s4552_s1 + $0x130] ss:$8 sps:$4 sm:$0xff]   ;;  %v2974_v21 = vld [vmem:[%s4552_s1 + $0x124] ss:$8 sps:$4 sm:$0xff]   ;;  %v2977_v23 = vld [vmem:[%s4552_s1 + $0x120] ss:$8 sps:$4 sm:$0xff]  }
   0x9   :  { %2091 = vmatprep.subr.bf16.mxu1 %v2956_v9  ;;  %v2978_v24 = vld [vmem:[%s4552_s1 + $0x14] ss:$8 sps:$4 sm:$0xff]   ;;  %v2982_v26 = vld [vmem:[%s4552_s1 + $0x10] ss:$8 sps:$4 sm:$0xff]   ;;  %v2984_v28 = vld [vmem:[%s4552_s1 + $0x4] ss:$8 sps:$4 sm:$0xff]  }
   0xa   :  { %v2980_v25 = vld [vmem:[%s4552_s1 + $0x114] ss:$8 sps:$4 sm:$0xff]   ;;  %v2983_v27 = vld [vmem:[%s4552_s1 + $0x110] ss:$8 sps:$4 sm:$0xff]   ;;  %v2986_v29 = vld [vmem:[%s4552_s1 + $0x104] ss:$8 sps:$4 sm:$0xff]  }
   0xb   :  { %2051 = vmatpush1.bf16.msra.mxu0 %v2958_v10  ;;  %v2988_v30 = vld [vmem:[%s4552_s1] ss:$8 sps:$4 sm:$0xff]   ;;  %v2990_v32 = vld [vmem:[%s4552_s1 + $0xf4] ss:$8 sps:$4 sm:$0xff]   ;;  %v2994_v34 = vld [vmem:[%s4552_s1 + $0xf0] ss:$8 sps:$4 sm:$0xff]  }
   0xc   :  { %2092 = vmatpush1.bf16.msra.mxu1 %v2959_v11  ;;  %2052 = vmatprep.subr.bf16.mxu0 %v2960_v12  ;;  %v2989_v31 = vld [vmem:[%s4552_s1 + $0x100] ss:$8 sps:$4 sm:$0xff]   ;;  %v2992_v33 = vld [vmem:[%s4552_s1 + $0x1f4] ss:$8 sps:$4 sm:$0xff]   ;;  %v2995_v35 = vld [vmem:[%s4552_s1 + $0x1f0] ss:$8 sps:$4 sm:$0xff]  }
   0xd   :  { %2093 = vmatprep.subr.bf16.mxu1 %v2962_v13  ;;  %v2996_v36 = vld [vmem:[%s4552_s1 + $0xe4] ss:$8 sps:$4 sm:$0xff]   ;;  %v3000_v38 = vld [vmem:[%s4552_s1 + $0xe0] ss:$8 sps:$4 sm:$0xff]   ;;  %v3002_v40 = vld [vmem:[%s4552_s1 + $0xd4] ss:$8 sps:$4 sm:$0xff]  }
   0xe   :  { %v2998_v37 = vld [vmem:[%s4552_s1 + $0x1e4] ss:$8 sps:$4 sm:$0xff]   ;;  %v3001_v39 = vld [vmem:[%s4552_s1 + $0x1e0] ss:$8 sps:$4 sm:$0xff]   ;;  %v3004_v41 = vld [vmem:[%s4552_s1 + $0x1d4] ss:$8 sps:$4 sm:$0xff]  }
   0xf   :  { %2053 = vmatpush1.bf16.msra.mxu0 %v2964_v14  ;;  %v3006_v42 = vld [vmem:[%s4552_s1 + $0xd0] ss:$8 sps:$4 sm:$0xff]   ;;  %v3008_v44 = vld [vmem:[%s4552_s1 + $0xc4] ss:$8 sps:$4 sm:$0xff]   ;;  %v3012_v49 = vld [vmem:[%s4552_s1 + $0xc0] ss:$8 sps:$4 sm:$0xff]  }
  0x10   :  { %2094 = vmatpush1.bf16.msra.mxu1 %v2965_v15  ;;  %2054 = vmatprep.subr.bf16.mxu0 %v2966_v16  ;;  %v3007_v43 = vld [vmem:[%s4552_s1 + $0x1d0] ss:$8 sps:$4 sm:$0xff]   ;;  %v3010_v45 = vld [vmem:[%s4552_s1 + $0x1c4] ss:$8 sps:$4 sm:$0xff]   ;;  %v3013_v50 = vld [vmem:[%s4552_s1 + $0x1c0] ss:$8 sps:$4 sm:$0xff]  }
  0x11   :  { %2095 = vmatprep.subr.bf16.mxu1 %v2968_v17  ;;  %v14_v46 = vld [vmem:[%s4553_s0] sm:$0xff]  ;;  %v15_v48 = vld [vmem:[%s4553_s0 + $0x8] sm:$0xff]  ;;  %v3014_v52 = vld [vmem:[%s4552_s1 + $0xb4] ss:$8 sps:$4 sm:$0xff]  }
  0x12   :  { %v2592_v47 = vcombine.high %v14_v46, %v14_v46  ;;  %v2594_v51 = vcombine.high %v15_v48, %v15_v48  ;;  %v3016_v53 = vld [vmem:[%s4552_s1 + $0x1b4] ss:$8 sps:$4 sm:$0xff]   ;;  %v3018_v54 = vld [vmem:[%s4552_s1 + $0xb0] ss:$8 sps:$4 sm:$0xff]   ;;  %v3020_v56 = vld [vmem:[%s4552_s1 + $0xa4] ss:$8 sps:$4 sm:$0xff]   ;;  %v2591_v6 = vcombine.low %v14_v46, %v14_v46  ;;  %v2593_v7 = vcombine.low %v15_v48, %v15_v48 }
  0x13   :  { %2055 = vmatpush1.bf16.msra.mxu0 %v2970_v18  ;;  %v3019_v55 = vld [vmem:[%s4552_s1 + $0x1b0] ss:$8 sps:$4 sm:$0xff]   ;;  %v3022_v57 = vld [vmem:[%s4552_s1 + $0x1a4] ss:$8 sps:$4 sm:$0xff]   ;;  %v3024_v58 = vld [vmem:[%s4552_s1 + $0xa0] ss:$8 sps:$4 sm:$0xff]  }
  0x14   :  { %2096 = vmatpush1.bf16.msra.mxu1 %v2971_v19  ;;  %2056 = vmatprep.subr.bf16.mxu0 %v2972_v20  ;;  %v3025_v59 = vld [vmem:[%s4552_s1 + $0x1a0] ss:$8 sps:$4 sm:$0xff]   ;;  %v3026_v60 = vld [vmem:[%s4552_s1 + $0x94] ss:$8 sps:$4 sm:$0xff]   ;;  %v3030_v62 = vld [vmem:[%s4552_s1 + $0x90] ss:$8 sps:$4 sm:$0xff]  }
  0x15   :  { %2097 = vmatprep.subr.bf16.mxu1 %v2974_v21  ;;  %2078 = vmatprep.mubr.bf16.mxu0 %v2592_v47  ;;  %v3028_v61 = vld [vmem:[%s4552_s1 + $0x194] ss:$8 sps:$4 sm:$0xff]   ;;  %v3031_v63 = vld [vmem:[%s4552_s1 + $0x190] ss:$8 sps:$4 sm:$0xff]   ;;  %v3032_v0 = vld [vmem:[%s4552_s1 + $0x84] ss:$8 sps:$4 sm:$0xff]  }
  0x16   :  { %2119 = vmatprep.mubr.bf16.mxu1 %v2594_v51  ;;  %v3034_v1 = vld [vmem:[%s4552_s1 + $0x184] ss:$8 sps:$4 sm:$0xff]   ;;  %v3036_v2 = vld [vmem:[%s4552_s1 + $0x80] ss:$8 sps:$4 sm:$0xff]   ;;  %v3044_v4 = vld [vmem:[%s4552_s1 + $0x274] ss:$8 sps:$4 sm:$0xff]  }
  0x17   :  { %2057 = vmatpush1.bf16.msra.mxu0 %v2976_v22  ;;  %v3037_v3 = vld [vmem:[%s4552_s1 + $0x180] ss:$8 sps:$4 sm:$0xff]   ;;  %v3047_v5 = vld [vmem:[%s4552_s1 + $0x374] ss:$8 sps:$4 sm:$0xff]   ;;  %v3042_v8 = vld [vmem:[%s4552_s1 + $0x270] ss:$8 sps:$4 sm:$0xff]  }
  0x18   :  { %2098 = vmatpush1.bf16.msra.mxu1 %v2977_v23  ;;  %2058 = vmatprep.subr.bf16.mxu0 %v2978_v24  ;;  %v3045_v9 = vld [vmem:[%s4552_s1 + $0x370] ss:$8 sps:$4 sm:$0xff]   ;;  %v3050_v10 = vld [vmem:[%s4552_s1 + $0x264] ss:$8 sps:$4 sm:$0xff]   ;;  %v3048_v12 = vld [vmem:[%s4552_s1 + $0x260] ss:$8 sps:$4 sm:$0xff]  }
  0x19   :  { %2099 = vmatprep.subr.bf16.mxu1 %v2980_v25  ;;  %v3053_v11 = vld [vmem:[%s4552_s1 + $0x364] ss:$8 sps:$4 sm:$0xff]   ;;  %v3051_v13 = vld [vmem:[%s4552_s1 + $0x360] ss:$8 sps:$4 sm:$0xff]   ;;  %v3056_v14 = vld [vmem:[%s4552_s1 + $0x254] ss:$8 sps:$4 sm:$0xff]  }
  0x1a   :  { %v3059_v15 = vld [vmem:[%s4552_s1 + $0x354] ss:$8 sps:$4 sm:$0xff]   ;;  %v3054_v16 = vld [vmem:[%s4552_s1 + $0x250] ss:$8 sps:$4 sm:$0xff]   ;;  %v3062_v18 = vld [vmem:[%s4552_s1 + $0x244] ss:$8 sps:$4 sm:$0xff]  }
  0x1b   :  { %2059 = vmatpush1.bf16.msra.mxu0 %v2982_v26  ;;  %v3057_v17 = vld [vmem:[%s4552_s1 + $0x350] ss:$8 sps:$4 sm:$0xff]   ;;  %v3065_v19 = vld [vmem:[%s4552_s1 + $0x344] ss:$8 sps:$4 sm:$0xff]   ;;  %v3060_v20 = vld [vmem:[%s4552_s1 + $0x240] ss:$8 sps:$4 sm:$0xff]  }
  0x1c   :  { %2100 = vmatpush1.bf16.msra.mxu1 %v2983_v27  ;;  %2060 = vmatprep.subr.bf16.mxu0 %v2984_v28  ;;  %v3063_v21 = vld [vmem:[%s4552_s1 + $0x340] ss:$8 sps:$4 sm:$0xff]   ;;  %v3068_v22 = vld [vmem:[%s4552_s1 + $0x234] ss:$8 sps:$4 sm:$0xff]   ;;  %v3066_v24 = vld [vmem:[%s4552_s1 + $0x230] ss:$8 sps:$4 sm:$0xff]  }
  0x1d   :  { %2101 = vmatprep.subr.bf16.mxu1 %v2986_v29  ;;  %v3071_v23 = vld [vmem:[%s4552_s1 + $0x334] ss:$8 sps:$4 sm:$0xff]   ;;  %v3069_v25 = vld [vmem:[%s4552_s1 + $0x330] ss:$8 sps:$4 sm:$0xff]   ;;  %v3074_v26 = vld [vmem:[%s4552_s1 + $0x224] ss:$8 sps:$4 sm:$0xff]  }
  0x1e   :  { %v3077_v27 = vld [vmem:[%s4552_s1 + $0x324] ss:$8 sps:$4 sm:$0xff]   ;;  %v3072_v28 = vld [vmem:[%s4552_s1 + $0x220] ss:$8 sps:$4 sm:$0xff]   ;;  %v3107_v51 = vld [vmem:[%s4552_s1 + $0x3d4] ss:$8 sps:$4 sm:$0xff]  }
  0x1f   :  { %2061 = vmatpush1.bf16.msra.mxu0 %v2988_v30  ;;  %v3075_v29 = vld [vmem:[%s4552_s1 + $0x320] ss:$8 sps:$4 sm:$0xff]   ;;  %v3080_v30 = vld [vmem:[%s4552_s1 + $0x214] ss:$8 sps:$4 sm:$0xff]   ;;  %v3098_v46 = vld [vmem:[%s4552_s1 + $0x2e4] ss:$8 sps:$4 sm:$0xff]  }
  0x20   :  { %2102 = vmatpush1.bf16.msra.mxu1 %v2989_v31  ;;  %2062 = vmatprep.subr.bf16.mxu0 %v2990_v32  ;;  %v3083_v31 = vld [vmem:[%s4552_s1 + $0x314] ss:$8 sps:$4 sm:$0xff]   ;;  %v3101_v47 = vld [vmem:[%s4552_s1 + $0x3e4] ss:$8 sps:$4 sm:$0xff]   ;;  %v3096_v48 = vld [vmem:[%s4552_s1 + $0x2e0] ss:$8 sps:$4 sm:$0xff]  }
  0x21   :  { %2103 = vmatprep.subr.bf16.mxu1 %v2992_v33  ;;  %v3751_v32 = vld [vmem:[%s4553_s0 + $0x10] sm:$0xff]  ;;  %vm2534_vm3 = vmor %vm2533_vm2, %vm2532_vm1 }
  0x22   :  { %v3078_v33 = vld [vmem:[%s4552_s1 + $0x210] ss:$8 sps:$4 sm:$0xff]  }
  0x23   :  { %2063 = vmatpush2.bf16.msra.mxu0 %v2994_v34  ;;  %v3081_v34 = vld [vmem:[%s4552_s1 + $0x310] ss:$8 sps:$4 sm:$0xff]  }
  0x24   :  { %2104 = vmatpush2.bf16.msra.mxu1 %v2995_v35  ;;  %2064 = vmatprep.subr.bf16.mxu0 %v2996_v36  ;;  %v2596_v35 = vcombine.high %v3751_v32, %v3751_v32  ;;  %v3764_v36 = vld [vmem:[%s4553_s0 + $0x18] sm:$0xff] }
  0x25   :  { %2105 = vmatprep.subr.bf16.mxu1 %v2998_v37  ;;  %v3086_v37 = vld [vmem:[%s4552_s1 + $0x204] ss:$8 sps:$4 sm:$0xff]  }
  0x27   :  { %2065 = vmatpush2.bf16.msra.mxu0 %v3000_v38  ;;  %v2598_v38 = vcombine.high %v3764_v36, %v3764_v36 }
  0x28   :  { %2106 = vmatpush2.bf16.msra.mxu1 %v3001_v39  ;;  %2066 = vmatprep.subr.bf16.mxu0 %v3002_v40  ;;  %v3089_v39 = vld [vmem:[%s4552_s1 + $0x304] ss:$8 sps:$4 sm:$0xff]   ;;  %v3084_v40 = vld [vmem:[%s4552_s1 + $0x200] ss:$8 sps:$4 sm:$0xff]  }
  0x29   :  { %2107 = vmatprep.subr.bf16.mxu1 %v3004_v41  ;;  %v3087_v41 = vld [vmem:[%s4552_s1 + $0x300] ss:$8 sps:$4 sm:$0xff]  }
  0x2b   :  { %2067 = vmatpush2.bf16.msra.mxu0 %v3006_v42  ;;  %v3092_v42 = vld [vmem:[%s4552_s1 + $0x2f4] ss:$8 sps:$4 sm:$0xff]  }
  0x2c   :  { %2108 = vmatpush2.bf16.msra.mxu1 %v3007_v43  ;;  %2068 = vmatprep.subr.bf16.mxu0 %v3008_v44  ;;  %v3095_v43 = vld [vmem:[%s4552_s1 + $0x3f4] ss:$8 sps:$4 sm:$0xff]   ;;  %v3090_v44 = vld [vmem:[%s4552_s1 + $0x2f0] ss:$8 sps:$4 sm:$0xff]  }
  0x2d   :  { %2109 = vmatprep.subr.bf16.mxu1 %v3010_v45  ;;  %v3093_v45 = vld [vmem:[%s4552_s1 + $0x3f0] ss:$8 sps:$4 sm:$0xff]  }
  0x2f   :  { %2069 = vmatpush2.bf16.msra.mxu0 %v3012_v49  ;;  %v3099_v49 = vld [vmem:[%s4552_s1 + $0x3e0] ss:$8 sps:$4 sm:$0xff]  }
  0x30   :  { %2110 = vmatpush2.bf16.msra.mxu1 %v3013_v50  ;;  %2070 = vmatprep.subr.bf16.mxu0 %v3014_v52  ;;  %v3104_v50 = vld [vmem:[%s4552_s1 + $0x2d4] ss:$8 sps:$4 sm:$0xff]   ;;  %v3102_v52 = vld [vmem:[%s4552_s1 + $0x2d0] ss:$8 sps:$4 sm:$0xff]  }
  0x31   :  { %2111 = vmatprep.subr.bf16.mxu1 %v3016_v53  ;;  %v3105_v53 = vld [vmem:[%s4552_s1 + $0x3d0] ss:$8 sps:$4 sm:$0xff]  }
  0x33   :  { %2071 = vmatpush2.bf16.msra.mxu0 %v3018_v54  ;;  %v3110_v54 = vld [vmem:[%s4552_s1 + $0x2c4] ss:$8 sps:$4 sm:$0xff]  }
  0x34   :  { %2112 = vmatpush2.bf16.msra.mxu1 %v3019_v55  ;;  %2072 = vmatprep.subr.bf16.mxu0 %v3020_v56  ;;  %v3113_v55 = vld [vmem:[%s4552_s1 + $0x3c4] ss:$8 sps:$4 sm:$0xff]   ;;  %v3108_v56 = vld [vmem:[%s4552_s1 + $0x2c0] ss:$8 sps:$4 sm:$0xff]  }
  0x35   :  { %2113 = vmatprep.subr.bf16.mxu1 %v3022_v57  ;;  %v3111_v57 = vld [vmem:[%s4552_s1 + $0x3c0] ss:$8 sps:$4 sm:$0xff]  }
  0x37   :  { %2073 = vmatpush2.bf16.msra.mxu0 %v3024_v58  ;;  %v3116_v58 = vld [vmem:[%s4552_s1 + $0x2b4] ss:$8 sps:$4 sm:$0xff]  }
  0x38   :  { %2114 = vmatpush2.bf16.msra.mxu1 %v3025_v59  ;;  %2074 = vmatprep.subr.bf16.mxu0 %v3026_v60  ;;  %v3119_v59 = vld [vmem:[%s4552_s1 + $0x3b4] ss:$8 sps:$4 sm:$0xff]   ;;  %v3114_v60 = vld [vmem:[%s4552_s1 + $0x2b0] ss:$8 sps:$4 sm:$0xff]  }
  0x39   :  { %2115 = vmatprep.subr.bf16.mxu1 %v3028_v61  ;;  %v3117_v61 = vld [vmem:[%s4552_s1 + $0x3b0] ss:$8 sps:$4 sm:$0xff]  }
  0x3b   :  { %2075 = vmatpush2.bf16.msra.mxu0 %v3030_v62  ;;  %v3122_v62 = vld [vmem:[%s4552_s1 + $0x2a4] ss:$8 sps:$4 sm:$0xff]  }
  0x3c   :  { %2116 = vmatpush2.bf16.msra.mxu1 %v3031_v63  ;;  %2076 = vmatprep.subr.bf16.mxu0 %v3032_v0  ;;  %v3125_v63 = vld [vmem:[%s4552_s1 + $0x3a4] ss:$8 sps:$4 sm:$0xff]   ;;  %v3120_v0 = vld [vmem:[%s4552_s1 + $0x2a0] ss:$8 sps:$4 sm:$0xff]  }
  0x3d   :  { %2117 = vmatprep.subr.bf16.mxu1 %v3034_v1  ;;  %v3123_v1 = vld [vmem:[%s4552_s1 + $0x3a0] ss:$8 sps:$4 sm:$0xff]  }
  0x3f   :  { %2077 = vmatpush2.bf16.msra.mxu0 %v3036_v2  ;;  %v3128_v2 = vld [vmem:[%s4552_s1 + $0x294] ss:$8 sps:$4 sm:$0xff]  }
  0x40   :  { %2118 = vmatpush2.bf16.msra.mxu1 %v3037_v3  ;;  %2128 = vmatprep.subr.bf16.mxu0 %v3044_v4  ;;  %v3131_v3 = vld [vmem:[%s4552_s1 + $0x394] ss:$8 sps:$4 sm:$0xff]   ;;  %v3126_v4 = vld [vmem:[%s4552_s1 + $0x290] ss:$8 sps:$4 sm:$0xff]  }
  0x41   :  { %2169 = vmatprep.subr.bf16.mxu1 %v3047_v5  ;;  %v3129_v5 = vld [vmem:[%s4552_s1 + $0x390] ss:$8 sps:$4 sm:$0xff]  }
  0x42   :  { %2079 = vmatmul.mubr.bf16.vlgmr.msra.gmra.mxu0 %v2591_v6  ;;  %v3134_v6 = vld [vmem:[%s4552_s1 + $0x284] ss:$8 sps:$4 sm:$0xff]  }
  0x43   :  { %2120 = vmatmul.mubr.bf16.vlgmr.msra.gmra.mxu1 %v2593_v7  ;;  %2129 = vmatpush1.bf16.msra.mxu0 %v3042_v8  ;;  %v3137_v7 = vld [vmem:[%s4552_s1 + $0x384] ss:$8 sps:$4 sm:$0xff]   ;;  %v3132_v8 = vld [vmem:[%s4552_s1 + $0x280] ss:$8 sps:$4 sm:$0xff]  }
  0x44   :  { %2170 = vmatpush1.bf16.msra.mxu1 %v3045_v9  ;;  %2130 = vmatprep.subr.bf16.mxu0 %v3050_v10  ;;  %v3135_v9 = vld [vmem:[%s4552_s1 + $0x380] ss:$8 sps:$4 sm:$0xff]   ;;  %v3142_v10 = vld [vmem:[%s4552_s1 + $0x474] ss:$8 sps:$4 sm:$0xff]  }
  0x45   :  { %2171 = vmatprep.subr.bf16.mxu1 %v3053_v11  ;;  %2160 = vmatprep.mubr.bf16.mxu0 %v2596_v35  ;;  %v3147_v11 = vld [vmem:[%s4552_s1 + $0x574] ss:$8 sps:$4 sm:$0xff]   ;;  %v3169_v35 = vld [vmem:[%s4552_s1 + $0x530] ss:$8 sps:$4 sm:$0xff]  }
  0x46   :  { %2201 = vmatprep.mubr.bf16.mxu1 %v2598_v38  ;;  %v3172_v38 = vld [vmem:[%s4552_s1 + $0x420] ss:$8 sps:$4 sm:$0xff]  }
  0x47   :  { %2131 = vmatpush1.bf16.msra.mxu0 %v3048_v12  ;;  %v2595_v12 = vcombine.low %v3751_v32, %v3751_v32  ;;  %v3168_v32 = vld [vmem:[%s4552_s1 + $0x434] ss:$8 sps:$4 sm:$0xff]  }
  0x48   :  { %2172 = vmatpush1.bf16.msra.mxu1 %v3051_v13  ;;  %2132 = vmatprep.subr.bf16.mxu0 %v3056_v14  ;;  %v3140_v13 = vld [vmem:[%s4552_s1 + $0x470] ss:$8 sps:$4 sm:$0xff]   ;;  %v2597_v14 = vcombine.low %v3764_v36, %v3764_v36  ;;  %v3174_v36 = vld [vmem:[%s4552_s1 + $0x424] ss:$8 sps:$4 sm:$0xff]  }
  0x49   :  { %2173 = vmatprep.subr.bf16.mxu1 %v3059_v15  ;;  %v3145_v15 = vld [vmem:[%s4552_s1 + $0x570] ss:$8 sps:$4 sm:$0xff]  }
  0x4b   :  { %2133 = vmatpush1.bf16.msra.mxu0 %v3054_v16  ;;  %v3150_v16 = vld [vmem:[%s4552_s1 + $0x464] ss:$8 sps:$4 sm:$0xff]  }
  0x4c   :  { %2174 = vmatpush1.bf16.msra.mxu1 %v3057_v17  ;;  %2134 = vmatprep.subr.bf16.mxu0 %v3062_v18  ;;  %v3153_v17 = vld [vmem:[%s4552_s1 + $0x564] ss:$8 sps:$4 sm:$0xff]  }
  0x4d   :  { %2175 = vmatprep.subr.bf16.mxu1 %v3065_v19  ;;  %v3901_v18 = vld [vmem:[%s4553_s0 + $0x20] sm:$0xff] }
  0x4e   :  { %v2600_v19 = vcombine.high %v3901_v18, %v3901_v18 }
  0x4f   :  { %2135 = vmatpush1.bf16.msra.mxu0 %v3060_v20  ;;  %v3908_v20 = vld [vmem:[%s4553_s0 + $0x28] sm:$0xff] }
  0x50   :  { %2176 = vmatpush1.bf16.msra.mxu1 %v3063_v21  ;;  %2136 = vmatprep.subr.bf16.mxu0 %v3068_v22  ;;  %v3148_v21 = vld [vmem:[%s4552_s1 + $0x460] ss:$8 sps:$4 sm:$0xff]  }
  0x51   :  { %2177 = vmatprep.subr.bf16.mxu1 %v3071_v23  ;;  %v3151_v22 = vld [vmem:[%s4552_s1 + $0x560] ss:$8 sps:$4 sm:$0xff]   ;;  %v2602_v23 = vcombine.high %v3908_v20, %v3908_v20 }
  0x53   :  { %2137 = vmatpush1.bf16.msra.mxu0 %v3066_v24  ;;  %v3156_v24 = vld [vmem:[%s4552_s1 + $0x454] ss:$8 sps:$4 sm:$0xff]  }
  0x54   :  { %2178 = vmatpush1.bf16.msra.mxu1 %v3069_v25  ;;  %2138 = vmatprep.subr.bf16.mxu0 %v3074_v26  ;;  %v3159_v25 = vld [vmem:[%s4552_s1 + $0x554] ss:$8 sps:$4 sm:$0xff]   ;;  %v3154_v26 = vld [vmem:[%s4552_s1 + $0x450] ss:$8 sps:$4 sm:$0xff]  }
  0x55   :  { %2179 = vmatprep.subr.bf16.mxu1 %v3077_v27  ;;  %v3157_v27 = vld [vmem:[%s4552_s1 + $0x550] ss:$8 sps:$4 sm:$0xff]  }
  0x57   :  { %2139 = vmatpush1.bf16.msra.mxu0 %v3072_v28  ;;  %v3162_v28 = vld [vmem:[%s4552_s1 + $0x444] ss:$8 sps:$4 sm:$0xff]  }
  0x58   :  { %2180 = vmatpush1.bf16.msra.mxu1 %v3075_v29  ;;  %2140 = vmatprep.subr.bf16.mxu0 %v3080_v30  ;;  %v3165_v29 = vld [vmem:[%s4552_s1 + $0x544] ss:$8 sps:$4 sm:$0xff]   ;;  %v3160_v30 = vld [vmem:[%s4552_s1 + $0x440] ss:$8 sps:$4 sm:$0xff]  }
  0x59   :  { %2181 = vmatprep.subr.bf16.mxu1 %v3083_v31  ;;  %v3163_v31 = vld [vmem:[%s4552_s1 + $0x540] ss:$8 sps:$4 sm:$0xff]  }
  0x5b   :  { %2141 = vmatpush1.bf16.msra.mxu0 %v3078_v33  ;;  %v3171_v33 = vld [vmem:[%s4552_s1 + $0x534] ss:$8 sps:$4 sm:$0xff]  }
  0x5c   :  { %2182 = vmatpush1.bf16.msra.mxu1 %v3081_v34  ;;  %2142 = vmatprep.subr.bf16.mxu0 %v3086_v37  ;;  %v3166_v34 = vld [vmem:[%s4552_s1 + $0x430] ss:$8 sps:$4 sm:$0xff]   ;;  %v3177_v37 = vld [vmem:[%s4552_s1 + $0x524] ss:$8 sps:$4 sm:$0xff]  }
  0x5d   :  { %2183 = vmatprep.subr.bf16.mxu1 %v3089_v39  ;;  %v3175_v39 = vld [vmem:[%s4552_s1 + $0x520] ss:$8 sps:$4 sm:$0xff]  }
  0x5f   :  { %2143 = vmatpush1.bf16.msra.mxu0 %v3084_v40  ;;  %v3180_v40 = vld [vmem:[%s4552_s1 + $0x414] ss:$8 sps:$4 sm:$0xff]  }
  0x60   :  { %2184 = vmatpush1.bf16.msra.mxu1 %v3087_v41  ;;  %2144 = vmatprep.subr.bf16.mxu0 %v3092_v42  ;;  %v3183_v41 = vld [vmem:[%s4552_s1 + $0x514] ss:$8 sps:$4 sm:$0xff]   ;;  %v3178_v42 = vld [vmem:[%s4552_s1 + $0x410] ss:$8 sps:$4 sm:$0xff]  }
  0x61   :  { %2185 = vmatprep.subr.bf16.mxu1 %v3095_v43  ;;  %v3181_v43 = vld [vmem:[%s4552_s1 + $0x510] ss:$8 sps:$4 sm:$0xff]  }
  0x63   :  { %2145 = vmatpush2.bf16.msra.mxu0 %v3090_v44  ;;  %v3186_v44 = vld [vmem:[%s4552_s1 + $0x404] ss:$8 sps:$4 sm:$0xff]  }
  0x64   :  { %2186 = vmatpush2.bf16.msra.mxu1 %v3093_v45  ;;  %2146 = vmatprep.subr.bf16.mxu0 %v3098_v46  ;;  %v3189_v45 = vld [vmem:[%s4552_s1 + $0x504] ss:$8 sps:$4 sm:$0xff]   ;;  %v3184_v46 = vld [vmem:[%s4552_s1 + $0x400] ss:$8 sps:$4 sm:$0xff]  }
  0x65   :  { %2187 = vmatprep.subr.bf16.mxu1 %v3101_v47  ;;  %v3187_v47 = vld [vmem:[%s4552_s1 + $0x500] ss:$8 sps:$4 sm:$0xff]  }
  0x67   :  { %2147 = vmatpush2.bf16.msra.mxu0 %v3096_v48  ;;  %v3192_v48 = vld [vmem:[%s4552_s1 + $0x4f4] ss:$8 sps:$4 sm:$0xff]  }
  0x68   :  { %2188 = vmatpush2.bf16.msra.mxu1 %v3099_v49  ;;  %2148 = vmatprep.subr.bf16.mxu0 %v3104_v50  ;;  %v3195_v49 = vld [vmem:[%s4552_s1 + $0x5f4] ss:$8 sps:$4 sm:$0xff]   ;;  %v3190_v50 = vld [vmem:[%s4552_s1 + $0x4f0] ss:$8 sps:$4 sm:$0xff]  }
  0x69   :  { %2189 = vmatprep.subr.bf16.mxu1 %v3107_v51  ;;  %v3193_v51 = vld [vmem:[%s4552_s1 + $0x5f0] ss:$8 sps:$4 sm:$0xff]  }
  0x6b   :  { %2149 = vmatpush2.bf16.msra.mxu0 %v3102_v52  ;;  %v3198_v52 = vld [vmem:[%s4552_s1 + $0x4e4] ss:$8 sps:$4 sm:$0xff]  }
  0x6c   :  { %2190 = vmatpush2.bf16.msra.mxu1 %v3105_v53  ;;  %2150 = vmatprep.subr.bf16.mxu0 %v3110_v54  ;;  %v3201_v53 = vld [vmem:[%s4552_s1 + $0x5e4] ss:$8 sps:$4 sm:$0xff]   ;;  %v3196_v54 = vld [vmem:[%s4552_s1 + $0x4e0] ss:$8 sps:$4 sm:$0xff]  }
  0x6d   :  { %2191 = vmatprep.subr.bf16.mxu1 %v3113_v55  ;;  %v3199_v55 = vld [vmem:[%s4552_s1 + $0x5e0] ss:$8 sps:$4 sm:$0xff]  }
  0x6f   :  { %2151 = vmatpush2.bf16.msra.mxu0 %v3108_v56  ;;  %v3204_v56 = vld [vmem:[%s4552_s1 + $0x4d4] ss:$8 sps:$4 sm:$0xff]  }
  0x70   :  { %2192 = vmatpush2.bf16.msra.mxu1 %v3111_v57  ;;  %2152 = vmatprep.subr.bf16.mxu0 %v3116_v58  ;;  %v3207_v57 = vld [vmem:[%s4552_s1 + $0x5d4] ss:$8 sps:$4 sm:$0xff]   ;;  %v3202_v58 = vld [vmem:[%s4552_s1 + $0x4d0] ss:$8 sps:$4 sm:$0xff]  }
  0x71   :  { %2193 = vmatprep.subr.bf16.mxu1 %v3119_v59  ;;  %v3205_v59 = vld [vmem:[%s4552_s1 + $0x5d0] ss:$8 sps:$4 sm:$0xff]  }
  0x73   :  { %2153 = vmatpush2.bf16.msra.mxu0 %v3114_v60  ;;  %v3210_v60 = vld [vmem:[%s4552_s1 + $0x4c4] ss:$8 sps:$4 sm:$0xff]  }
  0x74   :  { %2194 = vmatpush2.bf16.msra.mxu1 %v3117_v61  ;;  %2154 = vmatprep.subr.bf16.mxu0 %v3122_v62  ;;  %v3213_v61 = vld [vmem:[%s4552_s1 + $0x5c4] ss:$8 sps:$4 sm:$0xff]   ;;  %v3208_v62 = vld [vmem:[%s4552_s1 + $0x4c0] ss:$8 sps:$4 sm:$0xff]  }
  0x75   :  { %2195 = vmatprep.subr.bf16.mxu1 %v3125_v63  ;;  %v3211_v63 = vld [vmem:[%s4552_s1 + $0x5c0] ss:$8 sps:$4 sm:$0xff]  }
  0x77   :  { %2155 = vmatpush2.bf16.msra.mxu0 %v3120_v0  ;;  %v3216_v0 = vld [vmem:[%s4552_s1 + $0x4b4] ss:$8 sps:$4 sm:$0xff]  }
  0x78   :  { %2196 = vmatpush2.bf16.msra.mxu1 %v3123_v1  ;;  %2156 = vmatprep.subr.bf16.mxu0 %v3128_v2  ;;  %v3219_v1 = vld [vmem:[%s4552_s1 + $0x5b4] ss:$8 sps:$4 sm:$0xff]   ;;  %v3214_v2 = vld [vmem:[%s4552_s1 + $0x4b0] ss:$8 sps:$4 sm:$0xff]  }
  0x79   :  { %2197 = vmatprep.subr.bf16.mxu1 %v3131_v3  ;;  %v3217_v3 = vld [vmem:[%s4552_s1 + $0x5b0] ss:$8 sps:$4 sm:$0xff]  }
  0x7b   :  { %2157 = vmatpush2.bf16.msra.mxu0 %v3126_v4  ;;  %v3222_v4 = vld [vmem:[%s4552_s1 + $0x4a4] ss:$8 sps:$4 sm:$0xff]  }
  0x7c   :  { %2198 = vmatpush2.bf16.msra.mxu1 %v3129_v5  ;;  %2158 = vmatprep.subr.bf16.mxu0 %v3134_v6  ;;  %v3225_v5 = vld [vmem:[%s4552_s1 + $0x5a4] ss:$8 sps:$4 sm:$0xff]   ;;  %v3220_v6 = vld [vmem:[%s4552_s1 + $0x4a0] ss:$8 sps:$4 sm:$0xff]  }
  0x7d   :  { %2199 = vmatprep.subr.bf16.mxu1 %v3137_v7  ;;  %v3223_v7 = vld [vmem:[%s4552_s1 + $0x5a0] ss:$8 sps:$4 sm:$0xff]  }
  0x7f   :  { %2159 = vmatpush2.bf16.msra.mxu0 %v3132_v8  ;;  %v3228_v8 = vld [vmem:[%s4552_s1 + $0x494] ss:$8 sps:$4 sm:$0xff]  }
  0x80   :  { %2200 = vmatpush2.bf16.msra.mxu1 %v3135_v9  ;;  %2210 = vmatprep.subr.bf16.mxu0 %v3142_v10  ;;  %v3231_v9 = vld [vmem:[%s4552_s1 + $0x594] ss:$8 sps:$4 sm:$0xff]   ;;  %v3226_v10 = vld [vmem:[%s4552_s1 + $0x490] ss:$8 sps:$4 sm:$0xff]  }
  0x81   :  { %2251 = vmatprep.subr.bf16.mxu1 %v3147_v11  ;;  %v3229_v11 = vld [vmem:[%s4552_s1 + $0x590] ss:$8 sps:$4 sm:$0xff]  }
  0x82   :  { %2161 = vmatmul.mubr.bf16.vlgmr.msra.gmra.mxu0 %v2595_v12  ;;  %v3234_v12 = vld [vmem:[%s4552_s1 + $0x484] ss:$8 sps:$4 sm:$0xff]  }
  0x83   :  { %2202 = vmatmul.mubr.bf16.vlgmr.msra.gmra.mxu1 %v2597_v14  ;;  %2211 = vmatpush1.bf16.msra.mxu0 %v3140_v13  ;;  %v3237_v13 = vld [vmem:[%s4552_s1 + $0x584] ss:$8 sps:$4 sm:$0xff]   ;;  %v3232_v14 = vld [vmem:[%s4552_s1 + $0x480] ss:$8 sps:$4 sm:$0xff]  }
  0x84   :  { %2252 = vmatpush1.bf16.msra.mxu1 %v3145_v15  ;;  %2212 = vmatprep.subr.bf16.mxu0 %v3150_v16  ;;  %v3235_v15 = vld [vmem:[%s4552_s1 + $0x580] ss:$8 sps:$4 sm:$0xff]   ;;  %v3242_v16 = vld [vmem:[%s4552_s1 + $0x674] ss:$8 sps:$4 sm:$0xff]  }
  0x85   :  { %2253 = vmatprep.subr.bf16.mxu1 %v3153_v17  ;;  %2242 = vmatprep.mubr.bf16.mxu0 %v2600_v19  ;;  %v3247_v17 = vld [vmem:[%s4552_s1 + $0x774] ss:$8 sps:$4 sm:$0xff]   ;;  %v3240_v19 = vld [vmem:[%s4552_s1 + $0x670] ss:$8 sps:$4 sm:$0xff]  }
  0x86   :  { %2283 = vmatprep.mubr.bf16.mxu1 %v2602_v23  ;;  %v2601_v23 = vcombine.low %v3908_v20, %v3908_v20 }
  0x87   :  { %2213 = vmatpush1.bf16.msra.mxu0 %v3148_v21  ;;  %v3245_v21 = vld [vmem:[%s4552_s1 + $0x770] ss:$8 sps:$4 sm:$0xff]  }
  0x88   :  { %2254 = vmatpush1.bf16.msra.mxu1 %v3151_v22  ;;  %2214 = vmatprep.subr.bf16.mxu0 %v3156_v24  ;;  %v2599_v22 = vcombine.low %v3901_v18, %v3901_v18  ;;  %v4105_v24 = vld [vmem:[%s4553_s0 + $0x30] sm:$0xff]  ;;  %v3253_v18 = vld [vmem:[%s4552_s1 + $0x764] ss:$8 sps:$4 sm:$0xff]  }
  0x89   :  { %2255 = vmatprep.subr.bf16.mxu1 %v3159_v25  ;;  %v4110_v25 = vld [vmem:[%s4553_s0 + $0x38] sm:$0xff]  ;;  %v2604_v20 = vcombine.high %v4105_v24, %v4105_v24 }
  0x8b   :  { %2215 = vmatpush1.bf16.msra.mxu0 %v3154_v26  ;;  %v3250_v26 = vld [vmem:[%s4552_s1 + $0x664] ss:$8 sps:$4 sm:$0xff]  }
  0x8c   :  { %2256 = vmatpush1.bf16.msra.mxu1 %v3157_v27  ;;  %2216 = vmatprep.subr.bf16.mxu0 %v3162_v28  ;;  %v2606_v27 = vcombine.high %v4110_v25, %v4110_v25  ;;  %v3248_v28 = vld [vmem:[%s4552_s1 + $0x660] ss:$8 sps:$4 sm:$0xff]  }
  0x8d   :  { %2257 = vmatprep.subr.bf16.mxu1 %v3165_v29  ;;  %v3251_v29 = vld [vmem:[%s4552_s1 + $0x760] ss:$8 sps:$4 sm:$0xff]  }
  0x8f   :  { %2217 = vmatpush1.bf16.msra.mxu0 %v3160_v30  ;;  %v3256_v30 = vld [vmem:[%s4552_s1 + $0x654] ss:$8 sps:$4 sm:$0xff]  }
  0x90   :  { %2258 = vmatpush1.bf16.msra.mxu1 %v3163_v31  ;;  %2218 = vmatprep.subr.bf16.mxu0 %v3168_v32  ;;  %v3259_v31 = vld [vmem:[%s4552_s1 + $0x754] ss:$8 sps:$4 sm:$0xff]   ;;  %v3254_v32 = vld [vmem:[%s4552_s1 + $0x650] ss:$8 sps:$4 sm:$0xff]  }
  0x91   :  { %2259 = vmatprep.subr.bf16.mxu1 %v3171_v33  ;;  %v3257_v33 = vld [vmem:[%s4552_s1 + $0x750] ss:$8 sps:$4 sm:$0xff]  }
  0x93   :  { %2219 = vmatpush1.bf16.msra.mxu0 %v3166_v34  ;;  %v3262_v34 = vld [vmem:[%s4552_s1 + $0x644] ss:$8 sps:$4 sm:$0xff]  }
  0x94   :  { %2260 = vmatpush1.bf16.msra.mxu1 %v3169_v35  ;;  %2220 = vmatprep.subr.bf16.mxu0 %v3174_v36  ;;  %v3265_v35 = vld [vmem:[%s4552_s1 + $0x744] ss:$8 sps:$4 sm:$0xff]   ;;  %v3260_v36 = vld [vmem:[%s4552_s1 + $0x640] ss:$8 sps:$4 sm:$0xff]  }
  0x95   :  { %2261 = vmatprep.subr.bf16.mxu1 %v3177_v37  ;;  %v3263_v37 = vld [vmem:[%s4552_s1 + $0x740] ss:$8 sps:$4 sm:$0xff]  }
  0x97   :  { %2221 = vmatpush1.bf16.msra.mxu0 %v3172_v38  ;;  %v3268_v38 = vld [vmem:[%s4552_s1 + $0x634] ss:$8 sps:$4 sm:$0xff]  }
  0x98   :  { %2262 = vmatpush1.bf16.msra.mxu1 %v3175_v39  ;;  %2222 = vmatprep.subr.bf16.mxu0 %v3180_v40  ;;  %v3271_v39 = vld [vmem:[%s4552_s1 + $0x734] ss:$8 sps:$4 sm:$0xff]   ;;  %v3266_v40 = vld [vmem:[%s4552_s1 + $0x630] ss:$8 sps:$4 sm:$0xff]  }
  0x99   :  { %2263 = vmatprep.subr.bf16.mxu1 %v3183_v41  ;;  %v3269_v41 = vld [vmem:[%s4552_s1 + $0x730] ss:$8 sps:$4 sm:$0xff]  }
  0x9b   :  { %2223 = vmatpush1.bf16.msra.mxu0 %v3178_v42  ;;  %v3274_v42 = vld [vmem:[%s4552_s1 + $0x624] ss:$8 sps:$4 sm:$0xff]  }
  0x9c   :  { %2264 = vmatpush1.bf16.msra.mxu1 %v3181_v43  ;;  %2224 = vmatprep.subr.bf16.mxu0 %v3186_v44  ;;  %v3277_v43 = vld [vmem:[%s4552_s1 + $0x724] ss:$8 sps:$4 sm:$0xff]   ;;  %v3272_v44 = vld [vmem:[%s4552_s1 + $0x620] ss:$8 sps:$4 sm:$0xff]  }
  0x9d   :  { %2265 = vmatprep.subr.bf16.mxu1 %v3189_v45  ;;  %v3275_v45 = vld [vmem:[%s4552_s1 + $0x720] ss:$8 sps:$4 sm:$0xff]  }
  0x9f   :  { %2225 = vmatpush1.bf16.msra.mxu0 %v3184_v46  ;;  %v3280_v46 = vld [vmem:[%s4552_s1 + $0x614] ss:$8 sps:$4 sm:$0xff]  }
  0xa0   :  { %2266 = vmatpush1.bf16.msra.mxu1 %v3187_v47  ;;  %2226 = vmatprep.subr.bf16.mxu0 %v3192_v48  ;;  %v3283_v47 = vld [vmem:[%s4552_s1 + $0x714] ss:$8 sps:$4 sm:$0xff]   ;;  %v3278_v48 = vld [vmem:[%s4552_s1 + $0x610] ss:$8 sps:$4 sm:$0xff]  }
  0xa1   :  { %2267 = vmatprep.subr.bf16.mxu1 %v3195_v49  ;;  %v3281_v49 = vld [vmem:[%s4552_s1 + $0x710] ss:$8 sps:$4 sm:$0xff]  }
  0xa3   :  { %2227 = vmatpush2.bf16.msra.mxu0 %v3190_v50  ;;  %v3286_v50 = vld [vmem:[%s4552_s1 + $0x604] ss:$8 sps:$4 sm:$0xff]  }
  0xa4   :  { %2268 = vmatpush2.bf16.msra.mxu1 %v3193_v51  ;;  %2228 = vmatprep.subr.bf16.mxu0 %v3198_v52  ;;  %v3289_v51 = vld [vmem:[%s4552_s1 + $0x704] ss:$8 sps:$4 sm:$0xff]   ;;  %v3284_v52 = vld [vmem:[%s4552_s1 + $0x600] ss:$8 sps:$4 sm:$0xff]  }
  0xa5   :  { %2269 = vmatprep.subr.bf16.mxu1 %v3201_v53  ;;  %v3287_v53 = vld [vmem:[%s4552_s1 + $0x700] ss:$8 sps:$4 sm:$0xff]  }
  0xa7   :  { %2229 = vmatpush2.bf16.msra.mxu0 %v3196_v54  ;;  %v3292_v54 = vld [vmem:[%s4552_s1 + $0x6f4] ss:$8 sps:$4 sm:$0xff]  }
  0xa8   :  { %2270 = vmatpush2.bf16.msra.mxu1 %v3199_v55  ;;  %2230 = vmatprep.subr.bf16.mxu0 %v3204_v56  ;;  %v3295_v55 = vld [vmem:[%s4552_s1 + $0x7f4] ss:$8 sps:$4 sm:$0xff]   ;;  %v3290_v56 = vld [vmem:[%s4552_s1 + $0x6f0] ss:$8 sps:$4 sm:$0xff]  }
  0xa9   :  { %2271 = vmatprep.subr.bf16.mxu1 %v3207_v57  ;;  %v3293_v57 = vld [vmem:[%s4552_s1 + $0x7f0] ss:$8 sps:$4 sm:$0xff]  }
  0xab   :  { %2231 = vmatpush2.bf16.msra.mxu0 %v3202_v58  ;;  %v3298_v58 = vld [vmem:[%s4552_s1 + $0x6e4] ss:$8 sps:$4 sm:$0xff]  }
  0xac   :  { %2272 = vmatpush2.bf16.msra.mxu1 %v3205_v59  ;;  %2232 = vmatprep.subr.bf16.mxu0 %v3210_v60  ;;  %v3301_v59 = vld [vmem:[%s4552_s1 + $0x7e4] ss:$8 sps:$4 sm:$0xff]   ;;  %v3296_v60 = vld [vmem:[%s4552_s1 + $0x6e0] ss:$8 sps:$4 sm:$0xff]  }
  0xad   :  { %2273 = vmatprep.subr.bf16.mxu1 %v3213_v61  ;;  %v3299_v61 = vld [vmem:[%s4552_s1 + $0x7e0] ss:$8 sps:$4 sm:$0xff]  }
  0xaf   :  { %2233 = vmatpush2.bf16.msra.mxu0 %v3208_v62  ;;  %v3304_v62 = vld [vmem:[%s4552_s1 + $0x6d4] ss:$8 sps:$4 sm:$0xff]  }
  0xb0   :  { %2274 = vmatpush2.bf16.msra.mxu1 %v3211_v63  ;;  %2234 = vmatprep.subr.bf16.mxu0 %v3216_v0  ;;  %v3307_v63 = vld [vmem:[%s4552_s1 + $0x7d4] ss:$8 sps:$4 sm:$0xff]   ;;  %v3302_v0 = vld [vmem:[%s4552_s1 + $0x6d0] ss:$8 sps:$4 sm:$0xff]  }
  0xb1   :  { %2275 = vmatprep.subr.bf16.mxu1 %v3219_v1  ;;  %v3305_v1 = vld [vmem:[%s4552_s1 + $0x7d0] ss:$8 sps:$4 sm:$0xff]  }
  0xb3   :  { %2235 = vmatpush2.bf16.msra.mxu0 %v3214_v2  ;;  %v3310_v2 = vld [vmem:[%s4552_s1 + $0x6c4] ss:$8 sps:$4 sm:$0xff]  }
  0xb4   :  { %2276 = vmatpush2.bf16.msra.mxu1 %v3217_v3  ;;  %2236 = vmatprep.subr.bf16.mxu0 %v3222_v4  ;;  %v3313_v3 = vld [vmem:[%s4552_s1 + $0x7c4] ss:$8 sps:$4 sm:$0xff]   ;;  %v3308_v4 = vld [vmem:[%s4552_s1 + $0x6c0] ss:$8 sps:$4 sm:$0xff]  }
  0xb5   :  { %2277 = vmatprep.subr.bf16.mxu1 %v3225_v5  ;;  %v3311_v5 = vld [vmem:[%s4552_s1 + $0x7c0] ss:$8 sps:$4 sm:$0xff]  }
  0xb7   :  { %2237 = vmatpush2.bf16.msra.mxu0 %v3220_v6  ;;  %v3316_v6 = vld [vmem:[%s4552_s1 + $0x6b4] ss:$8 sps:$4 sm:$0xff]  }
  0xb8   :  { %2278 = vmatpush2.bf16.msra.mxu1 %v3223_v7  ;;  %2238 = vmatprep.subr.bf16.mxu0 %v3228_v8  ;;  %v3319_v7 = vld [vmem:[%s4552_s1 + $0x7b4] ss:$8 sps:$4 sm:$0xff]   ;;  %v3314_v8 = vld [vmem:[%s4552_s1 + $0x6b0] ss:$8 sps:$4 sm:$0xff]  }
  0xb9   :  { %2279 = vmatprep.subr.bf16.mxu1 %v3231_v9  ;;  %v3317_v9 = vld [vmem:[%s4552_s1 + $0x7b0] ss:$8 sps:$4 sm:$0xff]  }
  0xbb   :  { %2239 = vmatpush2.bf16.msra.mxu0 %v3226_v10  ;;  %v3322_v10 = vld [vmem:[%s4552_s1 + $0x6a4] ss:$8 sps:$4 sm:$0xff]  }
  0xbc   :  { %2280 = vmatpush2.bf16.msra.mxu1 %v3229_v11  ;;  %2240 = vmatprep.subr.bf16.mxu0 %v3234_v12  ;;  %v3325_v11 = vld [vmem:[%s4552_s1 + $0x7a4] ss:$8 sps:$4 sm:$0xff]   ;;  %v3320_v12 = vld [vmem:[%s4552_s1 + $0x6a0] ss:$8 sps:$4 sm:$0xff]  }
  0xbd   :  { %2281 = vmatprep.subr.bf16.mxu1 %v3237_v13  ;;  %v3323_v13 = vld [vmem:[%s4552_s1 + $0x7a0] ss:$8 sps:$4 sm:$0xff]  }
  0xbf   :  { %2241 = vmatpush2.bf16.msra.mxu0 %v3232_v14  ;;  %v3328_v14 = vld [vmem:[%s4552_s1 + $0x694] ss:$8 sps:$4 sm:$0xff]  }
  0xc0   :  { %2282 = vmatpush2.bf16.msra.mxu1 %v3235_v15  ;;  %2292 = vmatprep.subr.bf16.mxu0 %v3242_v16  ;;  %v3331_v15 = vld [vmem:[%s4552_s1 + $0x794] ss:$8 sps:$4 sm:$0xff]   ;;  %v3326_v16 = vld [vmem:[%s4552_s1 + $0x690] ss:$8 sps:$4 sm:$0xff]  }
  0xc1   :  { %2333 = vmatprep.subr.bf16.mxu1 %v3247_v17  ;;  %v3329_v17 = vld [vmem:[%s4552_s1 + $0x790] ss:$8 sps:$4 sm:$0xff]  }
  0xc2   :  { %2243 = vmatmul.mubr.bf16.vlgmr.msra.gmra.mxu0 %v2599_v22  ;;  %v3332_v22 = vld [vmem:[%s4552_s1 + $0x680] ss:$8 sps:$4 sm:$0xff]  }
  0xc3   :  { %2284 = vmatmul.mubr.bf16.vlgmr.msra.gmra.mxu1 %v2601_v23  ;;  %2293 = vmatpush1.bf16.msra.mxu0 %v3240_v19  ;;  %v3334_v19 = vld [vmem:[%s4552_s1 + $0x684] ss:$8 sps:$4 sm:$0xff]   ;;  %v3335_v23 = vld [vmem:[%s4552_s1 + $0x780] ss:$8 sps:$4 sm:$0xff]  }
  0xc4   :  { %2334 = vmatpush1.bf16.msra.mxu1 %v3245_v21  ;;  %2294 = vmatprep.subr.bf16.mxu0 %v3250_v26  ;;  %v3337_v21 = vld [vmem:[%s4552_s1 + $0x784] ss:$8 sps:$4 sm:$0xff]   ;;  %v3342_v26 = vld [vmem:[%s4552_s1 + $0x874] ss:$8 sps:$4 sm:$0xff]  }
  0xc5   :  { %2335 = vmatprep.subr.bf16.mxu1 %v3253_v18  ;;  %2324 = vmatprep.mubr.bf16.mxu0 %v2604_v20  ;;  %v3347_v18 = vld [vmem:[%s4552_s1 + $0x974] ss:$8 sps:$4 sm:$0xff]   ;;  %v2603_v20 = vcombine.low %v4105_v24, %v4105_v24  ;;  %v3345_v24 = vld [vmem:[%s4552_s1 + $0x970] ss:$8 sps:$4 sm:$0xff]  }
  0xc6   :  { %2365 = vmatprep.mubr.bf16.mxu1 %v2606_v27  ;;  %v2605_v27 = vcombine.low %v4110_v25, %v4110_v25  ;;  %v3350_v25 = vld [vmem:[%s4552_s1 + $0x864] ss:$8 sps:$4 sm:$0xff]  }
  0xc7   :  { %2295 = vmatpush1.bf16.msra.mxu0 %v3248_v28  ;;  %v4309_v28 = vld [vmem:[%s4553_s0 + $0x40] sm:$0xff] }
  0xc8   :  { %2336 = vmatpush1.bf16.msra.mxu1 %v3251_v29  ;;  %2296 = vmatprep.subr.bf16.mxu0 %v3256_v30  ;;  %v4314_v29 = vld [vmem:[%s4553_s0 + $0x48] sm:$0xff]  ;;  %v3340_v30 = vld [vmem:[%s4552_s1 + $0x870] ss:$8 sps:$4 sm:$0xff]  }
  0xc9   :  { %2337 = vmatprep.subr.bf16.mxu1 %v3259_v31  ;;  %v3353_v31 = vld [vmem:[%s4552_s1 + $0x964] ss:$8 sps:$4 sm:$0xff]  }
  0xcb   :  { %2297 = vmatpush1.bf16.msra.mxu0 %v3254_v32  ;;  %v2608_v32 = vcombine.high %v4309_v28, %v4309_v28 }
  0xcc   :  { %2338 = vmatpush1.bf16.msra.mxu1 %v3257_v33  ;;  %2298 = vmatprep.subr.bf16.mxu0 %v3262_v34  ;;  %v2610_v33 = vcombine.high %v4314_v29, %v4314_v29 }
  0xcd   :  { %2339 = vmatprep.subr.bf16.mxu1 %v3265_v35 }
  0xcf   :  { %2299 = vmatpush1.bf16.msra.mxu0 %v3260_v36 }
  0xd0   :  { %2340 = vmatpush1.bf16.msra.mxu1 %v3263_v37  ;;  %2300 = vmatprep.subr.bf16.mxu0 %v3268_v38  ;;  %v3348_v37 = vld [vmem:[%s4552_s1 + $0x860] ss:$8 sps:$4 sm:$0xff]  }
  0xd1   :  { %2341 = vmatprep.subr.bf16.mxu1 %v3271_v39  ;;  %v3351_v38 = vld [vmem:[%s4552_s1 + $0x960] ss:$8 sps:$4 sm:$0xff]  }
  0xd3   :  { %2301 = vmatpush1.bf16.msra.mxu0 %v3266_v40 }
  0xd4   :  { %2342 = vmatpush1.bf16.msra.mxu1 %v3269_v41  ;;  %2302 = vmatprep.subr.bf16.mxu0 %v3274_v42  ;;  %v3356_v41 = vld [vmem:[%s4552_s1 + $0x854] ss:$8 sps:$4 sm:$0xff]  }
  0xd5   :  { %2343 = vmatprep.subr.bf16.mxu1 %v3277_v43  ;;  %v3359_v42 = vld [vmem:[%s4552_s1 + $0x954] ss:$8 sps:$4 sm:$0xff]  }
  0xd7   :  { %2303 = vmatpush1.bf16.msra.mxu0 %v3272_v44 }
  0xd8   :  { %2344 = vmatpush1.bf16.msra.mxu1 %v3275_v45  ;;  %2304 = vmatprep.subr.bf16.mxu0 %v3280_v46  ;;  %v3354_v46 = vld [vmem:[%s4552_s1 + $0x850] ss:$8 sps:$4 sm:$0xff]  }
  0xd9   :  { %2345 = vmatprep.subr.bf16.mxu1 %v3283_v47  ;;  %v3357_v47 = vld [vmem:[%s4552_s1 + $0x950] ss:$8 sps:$4 sm:$0xff]  }
  0xdb   :  { %2305 = vmatpush1.bf16.msra.mxu0 %v3278_v48 }
  0xdc   :  { %2346 = vmatpush1.bf16.msra.mxu1 %v3281_v49  ;;  %2306 = vmatprep.subr.bf16.mxu0 %v3286_v50  ;;  %v3362_v50 = vld [vmem:[%s4552_s1 + $0x844] ss:$8 sps:$4 sm:$0xff]  }
  0xdd   :  { %2347 = vmatprep.subr.bf16.mxu1 %v3289_v51  ;;  %v3365_v51 = vld [vmem:[%s4552_s1 + $0x944] ss:$8 sps:$4 sm:$0xff]  }
  0xdf   :  { %2307 = vmatpush1.bf16.msra.mxu0 %v3284_v52  ;;  %v3360_v52 = vld [vmem:[%s4552_s1 + $0x840] ss:$8 sps:$4 sm:$0xff]  }
  0xe0   :  { %2348 = vmatpush1.bf16.msra.mxu1 %v3287_v53  ;;  %2308 = vmatprep.subr.bf16.mxu0 %v3292_v54  ;;  %v3363_v53 = vld [vmem:[%s4552_s1 + $0x940] ss:$8 sps:$4 sm:$0xff]   ;;  %v3368_v54 = vld [vmem:[%s4552_s1 + $0x834] ss:$8 sps:$4 sm:$0xff]  }
  0xe1   :  { %2349 = vmatprep.subr.bf16.mxu1 %v3295_v55  ;;  %v3371_v55 = vld [vmem:[%s4552_s1 + $0x934] ss:$8 sps:$4 sm:$0xff]  }
  0xe3   :  { %2309 = vmatpush2.bf16.msra.mxu0 %v3290_v56  ;;  %v3366_v56 = vld [vmem:[%s4552_s1 + $0x830] ss:$8 sps:$4 sm:$0xff]  }
  0xe4   :  { %2350 = vmatpush2.bf16.msra.mxu1 %v3293_v57  ;;  %2310 = vmatprep.subr.bf16.mxu0 %v3298_v58  ;;  %v3369_v57 = vld [vmem:[%s4552_s1 + $0x930] ss:$8 sps:$4 sm:$0xff]   ;;  %v3374_v58 = vld [vmem:[%s4552_s1 + $0x824] ss:$8 sps:$4 sm:$0xff]  }
  0xe5   :  { %2351 = vmatprep.subr.bf16.mxu1 %v3301_v59  ;;  %v3377_v59 = vld [vmem:[%s4552_s1 + $0x924] ss:$8 sps:$4 sm:$0xff]  }
  0xe7   :  { %2311 = vmatpush2.bf16.msra.mxu0 %v3296_v60  ;;  %v3372_v60 = vld [vmem:[%s4552_s1 + $0x820] ss:$8 sps:$4 sm:$0xff]  }
  0xe8   :  { %2352 = vmatpush2.bf16.msra.mxu1 %v3299_v61  ;;  %2312 = vmatprep.subr.bf16.mxu0 %v3304_v62  ;;  %v3375_v61 = vld [vmem:[%s4552_s1 + $0x920] ss:$8 sps:$4 sm:$0xff]   ;;  %v3380_v62 = vld [vmem:[%s4552_s1 + $0x814] ss:$8 sps:$4 sm:$0xff]  }
  0xe9   :  { %2353 = vmatprep.subr.bf16.mxu1 %v3307_v63  ;;  %v3383_v63 = vld [vmem:[%s4552_s1 + $0x914] ss:$8 sps:$4 sm:$0xff]  }
  0xeb   :  { %2313 = vmatpush2.bf16.msra.mxu0 %v3302_v0  ;;  %v3378_v0 = vld [vmem:[%s4552_s1 + $0x810] ss:$8 sps:$4 sm:$0xff]  }
  0xec   :  { %2354 = vmatpush2.bf16.msra.mxu1 %v3305_v1  ;;  %2314 = vmatprep.subr.bf16.mxu0 %v3310_v2  ;;  %v3381_v1 = vld [vmem:[%s4552_s1 + $0x910] ss:$8 sps:$4 sm:$0xff]   ;;  %v3386_v2 = vld [vmem:[%s4552_s1 + $0x804] ss:$8 sps:$4 sm:$0xff]  }
  0xed   :  { %2355 = vmatprep.subr.bf16.mxu1 %v3313_v3  ;;  %v3389_v3 = vld [vmem:[%s4552_s1 + $0x904] ss:$8 sps:$4 sm:$0xff]  }
  0xef   :  { %2315 = vmatpush2.bf16.msra.mxu0 %v3308_v4  ;;  %v3384_v4 = vld [vmem:[%s4552_s1 + $0x800] ss:$8 sps:$4 sm:$0xff]  }
  0xf0   :  { %2356 = vmatpush2.bf16.msra.mxu1 %v3311_v5  ;;  %2316 = vmatprep.subr.bf16.mxu0 %v3316_v6  ;;  %v3387_v5 = vld [vmem:[%s4552_s1 + $0x900] ss:$8 sps:$4 sm:$0xff]   ;;  %v3392_v6 = vld [vmem:[%s4552_s1 + $0x8f4] ss:$8 sps:$4 sm:$0xff]  }
  0xf1   :  { %2357 = vmatprep.subr.bf16.mxu1 %v3319_v7  ;;  %v3395_v7 = vld [vmem:[%s4552_s1 + $0x9f4] ss:$8 sps:$4 sm:$0xff]  }
  0xf3   :  { %2317 = vmatpush2.bf16.msra.mxu0 %v3314_v8  ;;  %v3390_v8 = vld [vmem:[%s4552_s1 + $0x8f0] ss:$8 sps:$4 sm:$0xff]  }
  0xf4   :  { %2358 = vmatpush2.bf16.msra.mxu1 %v3317_v9  ;;  %2318 = vmatprep.subr.bf16.mxu0 %v3322_v10  ;;  %v3393_v9 = vld [vmem:[%s4552_s1 + $0x9f0] ss:$8 sps:$4 sm:$0xff]   ;;  %v3398_v10 = vld [vmem:[%s4552_s1 + $0x8e4] ss:$8 sps:$4 sm:$0xff]  }
  0xf5   :  { %2359 = vmatprep.subr.bf16.mxu1 %v3325_v11  ;;  %v3401_v11 = vld [vmem:[%s4552_s1 + $0x9e4] ss:$8 sps:$4 sm:$0xff]  }
  0xf7   :  { %2319 = vmatpush2.bf16.msra.mxu0 %v3320_v12  ;;  %v3396_v12 = vld [vmem:[%s4552_s1 + $0x8e0] ss:$8 sps:$4 sm:$0xff]  }
  0xf8   :  { %2360 = vmatpush2.bf16.msra.mxu1 %v3323_v13  ;;  %2320 = vmatprep.subr.bf16.mxu0 %v3328_v14  ;;  %v3399_v13 = vld [vmem:[%s4552_s1 + $0x9e0] ss:$8 sps:$4 sm:$0xff]   ;;  %v3404_v14 = vld [vmem:[%s4552_s1 + $0x8d4] ss:$8 sps:$4 sm:$0xff]  }
  0xf9   :  { %2361 = vmatprep.subr.bf16.mxu1 %v3331_v15  ;;  %v3407_v15 = vld [vmem:[%s4552_s1 + $0x9d4] ss:$8 sps:$4 sm:$0xff]  }
  0xfb   :  { %2321 = vmatpush2.bf16.msra.mxu0 %v3326_v16  ;;  %v3402_v16 = vld [vmem:[%s4552_s1 + $0x8d0] ss:$8 sps:$4 sm:$0xff]  }
  0xfc   :  { %2362 = vmatpush2.bf16.msra.mxu1 %v3329_v17  ;;  %2322 = vmatprep.subr.bf16.mxu0 %v3334_v19  ;;  %v3405_v17 = vld [vmem:[%s4552_s1 + $0x9d0] ss:$8 sps:$4 sm:$0xff]   ;;  %v3410_v19 = vld [vmem:[%s4552_s1 + $0x8c4] ss:$8 sps:$4 sm:$0xff]  }
  0xfd   :  { %2363 = vmatprep.subr.bf16.mxu1 %v3337_v21  ;;  %v3413_v21 = vld [vmem:[%s4552_s1 + $0x9c4] ss:$8 sps:$4 sm:$0xff]  }
  0xff   :  { %2323 = vmatpush2.bf16.msra.mxu0 %v3332_v22  ;;  %v3408_v22 = vld [vmem:[%s4552_s1 + $0x8c0] ss:$8 sps:$4 sm:$0xff]  }
 0x100   :  { %2364 = vmatpush2.bf16.msra.mxu1 %v3335_v23  ;;  %2374 = vmatprep.subr.bf16.mxu0 %v3342_v26  ;;  %v3411_v23 = vld [vmem:[%s4552_s1 + $0x9c0] ss:$8 sps:$4 sm:$0xff]   ;;  %v3416_v26 = vld [vmem:[%s4552_s1 + $0x8b4] ss:$8 sps:$4 sm:$0xff]  }
 0x101   :  { %2415 = vmatprep.subr.bf16.mxu1 %v3347_v18  ;;  %v3419_v18 = vld [vmem:[%s4552_s1 + $0x9b4] ss:$8 sps:$4 sm:$0xff]  }
 0x102   :  { %v2080_v34 = vpop.f32.mrf.mxu0  ;;  %2325 = vmatmul.mubr.bf16.vlgmr.msra.gmra.mxu0 %v2603_v20  ;;  %v3414_v20 = vld [vmem:[%s4552_s1 + $0x8b0] ss:$8 sps:$4 sm:$0xff]  }
 0x103   :  { %v2121_v35 = vpop.f32.mrf.mxu1  ;;  %2366 = vmatmul.mubr.bf16.vlgmr.msra.gmra.mxu1 %v2605_v27  ;;  %2375 = vmatpush1.bf16.msra.mxu0 %v3340_v30  ;;  %v3417_v27 = vld [vmem:[%s4552_s1 + $0x9b0] ss:$8 sps:$4 sm:$0xff]   ;;  %v3422_v30 = vld [vmem:[%s4552_s1 + $0x8a4] ss:$8 sps:$4 sm:$0xff]  }
 0x104   :  { %v4332_v36 = vadd.f32 %v2121_v35, %v2080_v34  ;;  %2416 = vmatpush1.bf16.msra.mxu1 %v3345_v24  ;;  %v2082_v39 = vpop.f32.mrf.mxu0  ;;  %2376 = vmatprep.subr.bf16.mxu0 %v3350_v25  ;;  %v3425_v24 = vld [vmem:[%s4552_s1 + $0x9a4] ss:$8 sps:$4 sm:$0xff]   ;;  %v3420_v25 = vld [vmem:[%s4552_s1 + $0x8a0] ss:$8 sps:$4 sm:$0xff]   ;;  %v3426_v34 = vld [vmem:[%s4552_s1 + $0x890] ss:$8 sps:$4 sm:$0xff]  }
 0x105   :  { %v2123_v40 = vpop.f32.mrf.mxu1  ;;  %2417 = vmatprep.subr.bf16.mxu1 %v3353_v31  ;;  %2406 = vmatprep.mubr.bf16.mxu0 %v2608_v32  ;;  %v3423_v31 = vld [vmem:[%s4552_s1 + $0x9a0] ss:$8 sps:$4 sm:$0xff]   ;;  %v3428_v32 = vld [vmem:[%s4552_s1 + $0x894] ss:$8 sps:$4 sm:$0xff]   ;;  %v3429_v35 = vld [vmem:[%s4552_s1 + $0x990] ss:$8 sps:$4 sm:$0xff]  }
 0x106   :  { %v4346_v43 = vadd.f32 %v2123_v40, %v2082_v39  ;;  %2447 = vmatprep.mubr.bf16.mxu1 %v2610_v33  ;;  %v2084_v44 = vpop.f32.mrf.mxu0  ;;  %v3431_v33 = vld [vmem:[%s4552_s1 + $0x994] ss:$8 sps:$4 sm:$0xff]   ;;  %v3432_v39 = vld [vmem:[%s4552_s1 + $0x880] ss:$8 sps:$4 sm:$0xff]  }
 0x107   :  { %v2125_v45 = vpop.f32.mrf.mxu1  ;;  %2377 = vmatpush1.bf16.msra.mxu0 %v3348_v37  ;;  %v3434_v37 = vld [vmem:[%s4552_s1 + $0x884] ss:$8 sps:$4 sm:$0xff]   ;;  %v3435_v40 = vld [vmem:[%s4552_s1 + $0x980] ss:$8 sps:$4 sm:$0xff]   ;;  %v2609_v44 = vcombine.low %v4314_v29, %v4314_v29 }
 0x108   :  { %2418 = vmatpush1.bf16.msra.mxu1 %v3351_v38  ;;  %v2085_v48 = vpop.f32.mrf.mxu0  ;;  %2378 = vmatprep.subr.bf16.mxu0 %v3356_v41  ;;  %v3437_v38 = vld [vmem:[%s4552_s1 + $0x984] ss:$8 sps:$4 sm:$0xff]   ;;  %v3444_v41 = vld [vmem:[%s4552_s1 + $0xa14] ss:$8 sps:$4 sm:$0xff]   ;;  %v3442_v45 = vld [vmem:[%s4552_s1 + $0xa10] ss:$8 sps:$4 sm:$0xff]  }
 0x109   :  { %v2126_v49 = vpop.f32.mrf.mxu1  ;;  %2419 = vmatprep.subr.bf16.mxu1 %v3359_v42  ;;  %v2607_v42 = vcombine.low %v4309_v28, %v4309_v28  ;;  %v3445_v29 = vld [vmem:[%s4552_s1 + $0xa00] ss:$8 sps:$4 sm:$0xff]  }
 0x10a   :  { %v3449_v49 = vmov 0  }
 0x10b   :  { %2379 = vmatpush1.bf16.msra.mxu0 %v3354_v46  ;;  %v3447_v46 = vld [vmem:[%s4552_s1 + $0xa04] ss:$8 sps:$4 sm:$0xff]  }
 0x10c   :  { %2420 = vmatpush1.bf16.msra.mxu1 %v3357_v47  ;;  %2380 = vmatprep.subr.bf16.mxu0 %v3362_v50 }
 0x10d   :  { %2421 = vmatprep.subr.bf16.mxu1 %v3365_v51 }
 0x10f   :  { %2381 = vmatpush1.bf16.msra.mxu0 %v3360_v52 }
 0x110   :  { %2422 = vmatpush1.bf16.msra.mxu1 %v3363_v53  ;;  %2382 = vmatprep.subr.bf16.mxu0 %v3368_v54 }
 0x111   :  { %2423 = vmatprep.subr.bf16.mxu1 %v3371_v55 }
 0x113   :  { %2383 = vmatpush1.bf16.msra.mxu0 %v3366_v56  ;;  %v3448_v56 = vld [vmem:[%s4553_s0 + $0x50] ss:$0 sps:$4 sm:$0xff]  }
 0x114   :  { %2424 = vmatpush1.bf16.msra.mxu1 %v3369_v57  ;;  %2384 = vmatprep.subr.bf16.mxu0 %v3374_v58 }
 0x115   :  { %2425 = vmatprep.subr.bf16.mxu1 %v3377_v59 }
 0x117   :  { %2385 = vmatpush1.bf16.msra.mxu0 %v3372_v60 }
 0x118   :  { %2426 = vmatpush1.bf16.msra.mxu1 %v3375_v61  ;;  %2386 = vmatprep.subr.bf16.mxu0 %v3380_v62 }
 0x119   :  { %2427 = vmatprep.subr.bf16.mxu1 %v3383_v63 }
 0x11b   :  { %2387 = vmatpush1.bf16.msra.mxu0 %v3378_v0 }
 0x11c   :  { %2428 = vmatpush1.bf16.msra.mxu1 %v3381_v1  ;;  %2388 = vmatprep.subr.bf16.mxu0 %v3386_v2 }
 0x11d   :  { %2429 = vmatprep.subr.bf16.mxu1 %v3389_v3 }
 0x11f   :  { %2389 = vmatpush1.bf16.msra.mxu0 %v3384_v4 }
 0x120   :  { %2430 = vmatpush1.bf16.msra.mxu1 %v3387_v5  ;;  %2390 = vmatprep.subr.bf16.mxu0 %v3392_v6  ;;  %v3450_v6 = vmov 0.0  }
 0x121   :  { %2431 = vmatprep.subr.bf16.mxu1 %v3395_v7  ;;  %2535 = vst.msk [vmem:[%s4554_s3] sm:$0xf] %vm2534_vm3, %v3450_v6 }
 0x123   :  { %2391 = vmatpush2.bf16.msra.mxu0 %v3390_v8 }
 0x124   :  { %2432 = vmatpush2.bf16.msra.mxu1 %v3393_v9  ;;  %2392 = vmatprep.subr.bf16.mxu0 %v3398_v10 }
 0x125   :  { %2433 = vmatprep.subr.bf16.mxu1 %v3401_v11 }
 0x127   :  { %2393 = vmatpush2.bf16.msra.mxu0 %v3396_v12 }
 0x128   :  { %2434 = vmatpush2.bf16.msra.mxu1 %v3399_v13  ;;  %2394 = vmatprep.subr.bf16.mxu0 %v3404_v14 }
 0x129   :  { %2435 = vmatprep.subr.bf16.mxu1 %v3407_v15 }
 0x12b   :  { %2395 = vmatpush2.bf16.msra.mxu0 %v3402_v16 }
 0x12c   :  { %2436 = vmatpush2.bf16.msra.mxu1 %v3405_v17  ;;  %2396 = vmatprep.subr.bf16.mxu0 %v3410_v19 }
 0x12d   :  { %2437 = vmatprep.subr.bf16.mxu1 %v3413_v21 }
 0x12f   :  { %2397 = vmatpush2.bf16.msra.mxu0 %v3408_v22 }
 0x130   :  { %2438 = vmatpush2.bf16.msra.mxu1 %v3411_v23  ;;  %2398 = vmatprep.subr.bf16.mxu0 %v3416_v26 }
 0x131   :  { %2439 = vmatprep.subr.bf16.mxu1 %v3419_v18 }
 0x133   :  { %2399 = vmatpush2.bf16.msra.mxu0 %v3414_v20 }
 0x134   :  { %2440 = vmatpush2.bf16.msra.mxu1 %v3417_v27  ;;  %2400 = vmatprep.subr.bf16.mxu0 %v3422_v30 }
 0x135   :  { %2441 = vmatprep.subr.bf16.mxu1 %v3425_v24 }
 0x137   :  { %2401 = vmatpush2.bf16.msra.mxu0 %v3420_v25 }
 0x138   :  { %2442 = vmatpush2.bf16.msra.mxu1 %v3423_v31  ;;  %2402 = vmatprep.subr.bf16.mxu0 %v3428_v32 }
 0x139   :  { %2443 = vmatprep.subr.bf16.mxu1 %v3431_v33 }
 0x13b   :  { %2403 = vmatpush2.bf16.msra.mxu0 %v3426_v34 }
 0x13c   :  { %2444 = vmatpush2.bf16.msra.mxu1 %v3429_v35  ;;  %2404 = vmatprep.subr.bf16.mxu0 %v3434_v37 }
 0x13d   :  { %2445 = vmatprep.subr.bf16.mxu1 %v3437_v38 }
 0x13f   :  { %2405 = vmatpush2.bf16.msra.mxu0 %v3432_v39 }
 0x140   :  { %2446 = vmatpush2.bf16.msra.mxu1 %v3435_v40  ;;  %2468 = vmatprep.subr.bf16.mxu0 %v3444_v41 }
 0x142   :  { %v2162_v47 = vpop.f32.mrf.mxu0  ;;  %2407 = vmatmul.mubr.bf16.vlgmr.msra.gmra.mxu0 %v2607_v42 }
 0x143   :  { %2448 = vmatmul.mubr.bf16.vlgmr.msra.gmra.mxu1 %v2609_v44  ;;  %v2203_v48 = vpop.f32.mrf.mxu1  ;;  %v2163_v28 = vadd.f32 %v2162_v47, %v4332_v36  ;;  %2469 = vmatpush1.bf16.msra.mxu0 %v3442_v45 }
 0x144   :  { %2488 = vmatprep.mubr.bf16.mxu0 %v3449_v49  ;;  %v2164_v50 = vpop.f32.mrf.mxu0  ;;  %2470 = vmatprep.subr.bf16.mxu0 %v3447_v46  ;;  %v3451_v49 = vmov 1966171168  }
 0x145   :  { %v2205_v51 = vpop.f32.mrf.mxu1  ;;  %v2165_v52 = vadd.f32 %v2164_v50, %v4346_v43  ;;  %v2204_v53 = vadd.f32 %v2203_v48, %v2163_v28  ;;  %v2541_v50 = vunpack.c.l.s4 %v3451_v49 }
 0x146   :  { %v2166_v54 = vpop.f32.mrf.mxu0 }
 0x147   :  { %v2207_v55 = vpop.f32.mrf.mxu1  ;;  %v2206_v36 = vadd.f32 %v2205_v51, %v2165_v52  ;;  %2471 = vmatpush1.bf16.msra.mxu0 %v3445_v29 }
 0x148   :  { %v2167_v57 = vpop.f32.mrf.mxu0 }
 0x149   :  { %v2208_v58 = vpop.f32.mrf.mxu1 }
 0x14a   :  { %2936 = vmatmul.mubr.msk.bf16.vlgmr.msra.gmra.mxu0 %vm2042_vm0, %v3448_v56  ;;  %v2542_v58 = vunpack.c.0.s8 %v2541_v50 }
 0x182   :  { %v2244_v59 = vpop.f32.mrf.mxu0 }
 0x183   :  { %v2285_v60 = vpop.f32.mrf.mxu1  ;;  %v2245_v61 = vadd.f32 %v2244_v59, %v2204_v53  ;;  %v2543_v53 = vlaneseq }
 0x184   :  { %v2246_v62 = vpop.f32.mrf.mxu0 }
 0x185   :  { %v2287_v63 = vpop.f32.mrf.mxu1  ;;  %v2247_v0 = vadd.f32 %v2246_v62, %v2206_v36  ;;  %v2286_v43 = vadd.f32 %v2285_v60, %v2245_v61  ;;  %v2544_v62 = vshrl.u32 %v2543_v53, 7  ;;  %vm2558_vm5 = vcmp.lt.s32.totalorder %v2543_v53, 162 }
 0x186   :  { %v2248_v1 = vpop.f32.mrf.mxu0 }
 0x187   :  { %v2289_v2 = vpop.f32.mrf.mxu1  ;;  %v2288_v3 = vadd.f32 %v2287_v63, %v2247_v0 }
 0x188   :  { %v2249_v4 = vpop.f32.mrf.mxu0 }
 0x189   :  { %v2290_v5 = vpop.f32.mrf.mxu1  ;;  %v2545_v4 = vsub.s32 %v2542_v58, %v2544_v62 }
 0x1c2   :  { %v2326_v7 = vpop.f32.mrf.mxu0 }
 0x1c3   :  { %v2367_v8 = vpop.f32.mrf.mxu1  ;;  %v2327_v9 = vadd.f32 %v2326_v7, %v2286_v43 }
 0x1c4   :  { %v2328_v10 = vpop.f32.mrf.mxu0 }
 0x1c5   :  { %v2369_v11 = vpop.f32.mrf.mxu1  ;;  %v2329_v12 = vadd.f32 %v2328_v10, %v2288_v3  ;;  %v2368_v13 = vadd.f32 %v2367_v8, %v2327_v9  ;;  %v2536_v10 = vld [vmem:[%s4554_s3] ss:$2 sm:$0x3] }
 0x1c6   :  { %v2330_v14 = vpop.f32.mrf.mxu0 }
 0x1c7   :  { %v2371_v15 = vpop.f32.mrf.mxu1  ;;  %v2370_v16 = vadd.f32 %v2369_v11, %v2329_v12 }
 0x1c8   :  { %v2331_v17 = vpop.f32.mrf.mxu0 }
 0x1c9   :  { %v2372_v19 = vpop.f32.mrf.mxu1 }
 0x202   :  { %v2408_v21 = vpop.f32.mrf.mxu0 }
 0x203   :  { %v2449_v22 = vpop.f32.mrf.mxu1  ;;  %v2409_v18 = vadd.f32 %v2408_v21, %v2368_v13  ;;  %v2937_v13 = vld [vmem:[%s4554_s3 + $0x1] ss:$2 sm:$0x3] }
 0x204   :  { %v2410_v23 = vpop.f32.mrf.mxu0 }
 0x205   :  { %v2451_v26 = vpop.f32.mrf.mxu1  ;;  %v2411_v30 = vadd.f32 %v2410_v23, %v2370_v16  ;;  %v2450_v31 = vadd.f32 %v2449_v22, %v2409_v18 }
 0x206   :  { %v2412_v20 = vpop.f32.mrf.mxu0 }
 0x207   :  { %v2453_v27 = vpop.f32.mrf.mxu1  ;;  %v2452_v33 = vadd.f32 %v2451_v26, %v2411_v30 }
 0x208   :  { %v2413_v24 = vpop.f32.mrf.mxu0 }
 0x209   :  { %v2454_v25 = vpop.f32.mrf.mxu1 }
 0x20a   :  { %v2490_v32 = vpop.f32.mrf.mxu0 }
 0x20b   :  { %v2491_v34 = vadd.f32 %v2490_v32, %v2450_v31 }
 0x20c   :  { %v2492_v35 = vpop.f32.mrf.mxu0 }
 0x20d   :  { %v2500_v37 = vrot.slane %v2491_v34, 4  ;;  %v2513_v38 = vmul.f32 %v2491_v34, %v2491_v34  ;;  %v2493_v39 = vadd.f32 %v2492_v35, %v2452_v33  ;;  %2497 = vst [vmem:[%s4555_s2] sm:$0xff] %v2491_v34 }
 0x20e   :  { %v2494_v40 = vpop.f32.mrf.mxu0 }
 0x20f   :  { %v2501_v41 = vadd.f32 %v2500_v37, %v2491_v34  ;;  %v2515_v42 = vrot.slane %v2513_v38, 4  ;;  %2499 = vst.msk [vmem:[%s4555_s2 + $0x8] sm:$0xff] %vm2498_vm4, %v2493_v39  ;;  %v2506_v44 = vsel %vm2498_vm4, %v2493_v39, 0.0  ;;  %v2514_v45 = vmul.f32 %v2493_v39, %v2493_v39 }
 0x210   :  { %v2507_v46 = vrot.slane %v2506_v44, 4  ;;  %v2495_v47 = vpop.f32.mrf.mxu0 }
 0x211   :  { %v2502_v48 = vrot.slane %v2501_v41, 2  ;;  %v2516_v28 = vadd.f32 %v2515_v42, %v2513_v38  ;;  %v2521_v29 = vsel %vm2498_vm4, %v2514_v45, 0.0 }
 0x212   :  { %v2508_v51 = vadd.f32 %v2507_v46, %v2506_v44  ;;  %v2522_v52 = vrot.slane %v2521_v29, 4 }
 0x213   :  { %v2503_v54 = vadd.f32 %v2502_v48, %v2501_v41  ;;  %v2517_v55 = vrot.slane %v2516_v28, 2 }
 0x214   :  { %v2509_v56 = vrot.slane %v2508_v51, 2  ;;  %v2523_v36 = vadd.f32 %v2522_v52, %v2521_v29 }
 0x215   :  { %v2518_v57 = vadd.f32 %v2517_v55, %v2516_v28  ;;  %v2504_v59 = vrot.slane %v2503_v54, 1 }
 0x216   :  { %v2510_v60 = vadd.f32 %v2509_v56, %v2508_v51  ;;  %v2524_v61 = vrot.slane %v2523_v36, 2 }
 0x217   :  { %v2519_v63 = vrot.slane %v2518_v57, 1  ;;  %v2505_v1 = vadd.f32 %v2504_v59, %v2503_v54 }
 0x218   :  { %v2511_v0 = vrot.slane %v2510_v60, 1  ;;  %v2525_v43 = vadd.f32 %v2524_v61, %v2523_v36 }
 0x219   :  { %v2520_v5 = vadd.f32 %v2519_v63, %v2518_v57 }
 0x21a   :  { %v2512_v2 = vadd.f32 %v2511_v0, %v2510_v60  ;;  %v2526_v3 = vrot.slane %v2525_v43, 1 }
 0x21c   :  { %v2527_v6 = vadd.f32 %v2526_v3, %v2525_v43  ;;  %v2539_v7 = vcombine.low %v2505_v1, %v2512_v2 }
 0x21e   :  { %v2546_v8 = vrot.slane %v2539_v7, %v2545_v4  ;;  %v2565_v9 = vcombine.low %v2520_v5, %v2527_v6 }
 0x220   :  { %v2553_v11 = vrot.slane %v2546_v8, %v2545_v4  ;;  %v2572_v12 = vrot.slane %v2565_v9, %v2545_v4 }
 0x222   :  { %v2555_v14 = vadd.f32 %v2553_v11, %v2536_v10  ;;  %v2579_v15 = vrot.slane %v2572_v12, %v2545_v4 }
 0x224   :  { %2560 = vst.msk [vmem:[%s4554_s3] ss:$2 sm:$0x3] %vm2558_vm5, %v2555_v14  ;;  %v2581_v16 = vadd.f32 %v2937_v13, %v2579_v15 }
 0x226   :  { %2938 = vst.msk [vmem:[%s4554_s3 + $0x1] ss:$2 sm:$0x3] %vm2558_vm5, %v2581_v16 }

</bundles_post_ra>
